<compile_context>
chip_gen: v5e
topology: v5e:2x2
jax: 0.10.0
libtpu: 0.0.40
codegen_flags: <defaults>
</compile_context>

<pallas_src>
import numpy as np
import jax
import jax.numpy as jnp
from jax.experimental import pallas as pl
from jax.experimental.pallas import tpu as pltpu


# ----------------------------------------------------------------------------
# helpers
# ----------------------------------------------------------------------------
def _round_up(v, m):
    return ((v + m - 1) // m) * m


def _gelu_exact(x):
    # PyTorch nn.GELU default = exact erf formulation.
    return 0.5 * x * (1.0 + jax.lax.erf(x * 0.7071067811865476))


def _vmem_limit_bytes():
    """Generation-aware VMEM request (~80% of physical, safe fallback)."""
    try:
        info = pltpu.get_tpu_info()
        cap = getattr(info, "vmem_capacity_bytes", None)
        if cap:
            return int(cap * 0.8)
    except Exception:
        pass
    return 48 * 1024 * 1024


def window_partition(x, window_size):
    b, h, w, c = x.shape
    x = x.reshape(b, h // window_size, window_size, w // window_size,
                  window_size, c)
    x = jnp.transpose(x, (0, 1, 3, 2, 4, 5))
    return x.reshape(-1, window_size, window_size, c)


def window_reverse(windows, window_size, h, w):
    b = windows.shape[0] // ((h // window_size) * (w // window_size))
    x = windows.reshape(b, h // window_size, w // window_size,
                        window_size, window_size, -1)
    x = jnp.transpose(x, (0, 1, 3, 2, 4, 5))
    return x.reshape(b, h, w, -1)


def _relative_position_index(window_size):
    coords = np.stack(np.meshgrid(np.arange(window_size),
                                  np.arange(window_size), indexing="ij"))
    coords_flat = coords.reshape(2, -1)
    rel = coords_flat[:, :, None] - coords_flat[:, None, :]      # (2, N, N)
    rel = rel.transpose(1, 2, 0).astype(np.int32)                # (N, N, 2)
    rel[:, :, 0] += window_size - 1
    rel[:, :, 1] += window_size - 1
    rel[:, :, 0] *= 2 * window_size - 1
    return rel.sum(-1)                                           # (N, N)


def _shift_attn_mask(h, w, window_size, shift_size):
    img_mask = np.zeros((1, h, w, 1), dtype=np.float32)
    slices = (slice(0, -window_size),
              slice(-window_size, -shift_size),
              slice(-shift_size, None))
    cnt = 0
    for hs in slices:
        for wsl in slices:
            img_mask[:, hs, wsl, :] = cnt
            cnt += 1
    mw = img_mask.reshape(1, h // window_size, window_size,
                          w // window_size, window_size, 1)
    mw = mw.transpose(0, 1, 3, 2, 4, 5).reshape(-1, window_size * window_size)
    attn_mask = mw[:, None, :] - mw[:, :, None]
    attn_mask = np.where(attn_mask != 0, -100.0, 0.0).astype(np.float32)
    return jnp.asarray(attn_mask)                                # (nW, N, N)


# ----------------------------------------------------------------------------
# Window attention kernel (LN1 fused, fused QKV, single full-K projection)
# ----------------------------------------------------------------------------
def window_attention_forward(xw, rel_bias, mask, norm_g, norm_b,
                             wqkv, bqkv, wp, bp, *, num_heads, scale):
    """xw: (B, nW, N, C) raw (pre-LN) windows.
       rel_bias: (nH, N, N); mask: (nW, N, N) or (1, N, N) zeros."""
    b_img, n_win, n_tok, c = xw.shape
    hd = c // num_heads
    op_dtype = xw.dtype

    # Window-group tile: pipelining + dual-TC sharding on v7x, bounded VMEM.
    win_tile = 1
    for cand in range(min(n_win, 16), 0, -1):
        if n_win % cand == 0:
            win_tile = cand
            break
    m = win_tile * n_tok

    if mask.shape[0] == 1:           # no shift: single zero mask, never broadcast
        mask_spec = pl.BlockSpec((1, n_tok, n_tok), lambda i, j: (0, 0, 0))
    else:                            # shift: per-window mask, indexed by group
        mask_spec = pl.BlockSpec((win_tile, n_tok, n_tok), lambda i, j: (j, 0, 0))

    def kernel(x_ref, bias_ref, mask_ref, g_ref, bn_ref,
               wqkv_ref, bqkv_ref, wp_ref, bp_ref, o_ref, ctx_ref):
        # ---- fused LayerNorm (norm1) -------------------------------------
        x = x_ref[0].reshape(m, c).astype(jnp.float32)
        mu = jnp.mean(x, axis=-1, keepdims=True)
        xc = x - mu
        var = jnp.mean(xc * xc, axis=-1, keepdims=True)
        xn = xc * jax.lax.rsqrt(var + 1e-5)
        xn = xn * g_ref[...].astype(jnp.float32) + bn_ref[...].astype(jnp.float32)

        # ---- fused QKV projection: one (M,C)@(C,3C) matmul ----------------
        qkv = jnp.dot(xn.astype(wqkv_ref.dtype), wqkv_ref[...],
                      preferred_element_type=jnp.float32)
        qkv = qkv + bqkv_ref[...].astype(jnp.float32)
        q = (qkv[:, 0:c] * scale).reshape(win_tile, n_tok, c)
        k = qkv[:, c:2 * c].reshape(win_tile, n_tok, c)
        v = qkv[:, 2 * c:3 * c].reshape(win_tile, n_tok, c)

        msk = mask_ref[...].astype(jnp.float32)          # (1|wg, N, N)

        # ---- per-head attention, context scattered into lane slices -------
        for h in range(num_heads):                       # static, small
            lo, hi = h * hd, (h + 1) * hd
            qh = q[:, :, lo:hi].astype(op_dtype)
            kh = k[:, :, lo:hi].astype(op_dtype)
            s = jnp.einsum('wqd,wkd->wqk', qh, kh,
                           preferred_element_type=jnp.float32)
            s = s + bias_ref[h].astype(jnp.float32) + msk
            s = s - jnp.max(s, axis=-1, keepdims=True)
            e = jnp.exp(s)
            p = e * pl.reciprocal(jnp.sum(e, axis=-1, keepdims=True),
                                  approx=True)
            oh = jnp.einsum('wqk,wkd->wqd', p.astype(op_dtype),
                            v[:, :, lo:hi].astype(op_dtype),
                            preferred_element_type=jnp.float32)
            ctx_ref[:, lo:hi] = oh.reshape(m, hd).astype(ctx_ref.dtype)

        # ---- single full-K output projection ------------------------------
        y = jnp.dot(ctx_ref[...], wp_ref[...], preferred_element_type=jnp.float32)
        y = y + bp_ref[...].astype(jnp.float32)
        o_ref[0] = y.reshape(win_tile, n_tok, c).astype(o_ref.dtype)

    tokens = b_img * n_win * n_tok
    flops = (2 * tokens * c * 3 * c                      # QKV
             + 4 * b_img * n_win * num_heads * n_tok * n_tok * hd  # QK^T + PV
             + 2 * tokens * c * c)                       # out proj
    bytes_accessed = int(2 * xw.size * xw.dtype.itemsize
                         + (wqkv.size + wp.size) * wqkv.dtype.itemsize
                         + (rel_bias.size + mask.size) * 4)
    cost = pl.CostEstimate(flops=flops,
                           transcendentals=b_img * n_win * num_heads
                           * n_tok * n_tok,
                           bytes_accessed=bytes_accessed)

    out = pl.pallas_call(
        kernel,
        out_shape=jax.ShapeDtypeStruct((b_img, n_win, n_tok, c), xw.dtype),
        grid_spec=pltpu.PrefetchScalarGridSpec(
            num_scalar_prefetch=0,
            grid=(b_img, n_win // win_tile),
            in_specs=[
                pl.BlockSpec((1, win_tile, n_tok, c), lambda i, j: (i, j, 0, 0)),
                pl.BlockSpec((num_heads, n_tok, n_tok), lambda i, j: (0, 0, 0)),
                mask_spec,
                pl.BlockSpec((1, c), lambda i, j: (0, 0)),
                pl.BlockSpec((1, c), lambda i, j: (0, 0)),
                pl.BlockSpec((c, 3 * c), lambda i, j: (0, 0)),
                pl.BlockSpec((1, 3 * c), lambda i, j: (0, 0)),
                pl.BlockSpec((c, c), lambda i, j: (0, 0)),
                pl.BlockSpec((1, c), lambda i, j: (0, 0)),
            ],
            out_specs=pl.BlockSpec((1, win_tile, n_tok, c),
                                   lambda i, j: (i, j, 0, 0)),
            scratch_shapes=[pltpu.VMEM((m, c), op_dtype)],
        ),
        compiler_params=pltpu.CompilerParams(
            dimension_semantics=("parallel", "parallel"),
            vmem_limit_bytes=_vmem_limit_bytes()),
        cost_estimate=cost,
    )(xw, rel_bias, mask, norm_g.reshape(1, c), norm_b.reshape(1, c),
      wqkv, bqkv.reshape(1, 3 * c), wp, bp.reshape(1, c))
    return out


# ----------------------------------------------------------------------------
# MLP kernels:  out = x + fc2(GELU(fc1(LN2(x))))   (LN2 + residual fused in)
# ----------------------------------------------------------------------------
def _mlp_fused_kernel(x_ref, g_ref, bn_ref, w1_ref, b1_ref, w2_ref, b2_ref,
                      o_ref):
    x = x_ref[...].astype(jnp.float32)
    mu = jnp.mean(x, axis=-1, keepdims=True)
    xc = x - mu
    var = jnp.mean(xc * xc, axis=-1, keepdims=True)
    xn = xc * jax.lax.rsqrt(var + 1e-5)
    xn = xn * g_ref[...].astype(jnp.float32) + bn_ref[...].astype(jnp.float32)
    h = jnp.dot(xn.astype(w1_ref.dtype), w1_ref[...],
                preferred_element_type=jnp.float32)
    h = _gelu_exact(h + b1_ref[...].astype(jnp.float32))
    y = jnp.dot(h.astype(w2_ref.dtype), w2_ref[...],
                preferred_element_type=jnp.float32)
    y = y + b2_ref[...].astype(jnp.float32)
    o_ref[...] = (x + y).astype(o_ref.dtype)


def _mlp_tiled_kernel(x_ref, g_ref, bn_ref, w1_ref, b1_ref, w2_ref, b2_ref,
                      o_ref, acc_ref):
    kh = pl.program_id(1)

    @pl.when(kh == 0)
    def _init():
        acc_ref[...] = jnp.zeros_like(acc_ref)

    x = x_ref[...].astype(jnp.float32)
    mu = jnp.mean(x, axis=-1, keepdims=True)
    xc = x - mu
    var = jnp.mean(xc * xc, axis=-1, keepdims=True)
    xn = xc * jax.lax.rsqrt(var + 1e-5)
    xn = xn * g_ref[...].astype(jnp.float32) + bn_ref[...].astype(jnp.float32)
    h = jnp.dot(xn.astype(w1_ref.dtype), w1_ref[...],
                preferred_element_type=jnp.float32)
    h = _gelu_exact(h + b1_ref[...].astype(jnp.float32))
    acc_ref[...] += jnp.dot(h.astype(w2_ref.dtype), w2_ref[...],
                            preferred_element_type=jnp.float32)

    @pl.when(kh == pl.num_programs(1) - 1)
    def _finalize():
        o_ref[...] = (x + acc_ref[...] + b2_ref[...].astype(jnp.float32)
                      ).astype(o_ref.dtype)


def mlp_ln_residual_forward(x, gamma, beta, w1, b1, w2, b2, *, tile_m=1024):
    """x: (..., C) -> (..., C) = x + MLP(LN(x)). Weights (fan_in, fan_out)."""
    orig_shape = x.shape
    c_in = orig_shape[-1]
    hidden = w1.shape[1]
    c_out = w2.shape[1]
    assert c_out == c_in, "residual fusion requires out_features == in_features"

    x2 = x.reshape(-1, c_in)
    m = x2.shape[0]
    tile = min(tile_m, _round_up(m, 8))
    pm = _round_up(m, tile)
    if pm != m:
        x2 = jnp.pad(x2, ((0, pm - m), (0, 0)))

    vmem_limit = _vmem_limit_bytes()
    gamma2 = gamma.reshape(1, c_in)
    beta2 = beta.reshape(1, c_in)

    bytes_accessed = int(2 * x2.size * x2.dtype.itemsize
                         + (w1.size + w2.size + b1.size + b2.size)
                         * w1.dtype.itemsize)
    cost = pl.CostEstimate(flops=2 * pm * (c_in * hidden + hidden * c_out),
                           transcendentals=pm * hidden,
                           bytes_accessed=bytes_accessed)

    # Skip hidden tiling (and the accumulator) whenever the weights comfortably
    # fit VMEM; otherwise tile the hidden dim on an "arbitrary" k axis.
    w_bytes = (w1.size + w2.size) * w1.dtype.itemsize
    if w_bytes <= 12 * 1024 * 1024:
        out = pl.pallas_call(
            _mlp_fused_kernel,
            out_shape=jax.ShapeDtypeStruct((pm, c_out), x.dtype),
            grid_spec=pltpu.PrefetchScalarGridSpec(
                num_scalar_prefetch=0,
                grid=(pm // tile,),
                in_specs=[
                    pl.BlockSpec((tile, c_in), lambda i: (i, 0)),
                    pl.BlockSpec((1, c_in), lambda i: (0, 0)),
                    pl.BlockSpec((1, c_in), lambda i: (0, 0)),
                    pl.BlockSpec((c_in, hidden), lambda i: (0, 0)),
                    pl.BlockSpec((1, hidden), lambda i: (0, 0)),
                    pl.BlockSpec((hidden, c_out), lambda i: (0, 0)),
                    pl.BlockSpec((1, c_out), lambda i: (0, 0)),
                ],
                out_specs=pl.BlockSpec((tile, c_out), lambda i: (i, 0)),
            ),
            compiler_params=pltpu.CompilerParams(
                dimension_semantics=("parallel",),
                vmem_limit_bytes=vmem_limit),
            cost_estimate=cost,
        )(x2, gamma2, beta2, w1, b1.reshape(1, hidden), w2,
          b2.reshape(1, c_out))
    else:
        th = hidden
        for cand in (2048, 1536, 1024, 768, 512, 384, 256, 128):
            if hidden % cand == 0:
                th = cand
                break
        out = pl.pallas_call(
            _mlp_tiled_kernel,
            out_shape=jax.ShapeDtypeStruct((pm, c_out), x.dtype),
            grid_spec=pltpu.PrefetchScalarGridSpec(
                num_scalar_prefetch=0,
                grid=(pm // tile, hidden // th),
                in_specs=[
                    pl.BlockSpec((tile, c_in), lambda i, k: (i, 0)),
                    pl.BlockSpec((1, c_in), lambda i, k: (0, 0)),
                    pl.BlockSpec((1, c_in), lambda i, k: (0, 0)),
                    pl.BlockSpec((c_in, th), lambda i, k: (0, k)),
                    pl.BlockSpec((1, th), lambda i, k: (0, k)),
                    pl.BlockSpec((th, c_out), lambda i, k: (k, 0)),
                    pl.BlockSpec((1, c_out), lambda i, k: (0, 0)),
                ],
                out_specs=pl.BlockSpec((tile, c_out), lambda i, k: (i, 0)),
                scratch_shapes=[pltpu.VMEM((tile, c_out), jnp.float32)],
            ),
            compiler_params=pltpu.CompilerParams(
                dimension_semantics=("parallel", "arbitrary"),
                vmem_limit_bytes=vmem_limit),
            cost_estimate=cost,
        )(x2, gamma2, beta2, w1, b1.reshape(1, hidden), w2,
          b2.reshape(1, c_out))

    return out[:m].reshape(orig_shape)


# ----------------------------------------------------------------------------
# Full SwinTransformerBlock forward
# ----------------------------------------------------------------------------
def swin_block_forward(x, params, *, input_resolution, num_heads,
                       window_size, shift_size):
    h_res, w_res = input_resolution
    b, l, c = x.shape
    assert l == h_res * w_res, "input feature has wrong size"
    if min(h_res, w_res) <= window_size:
        shift_size = 0
        window_size = min(h_res, w_res)
    ws, ss = window_size, shift_size
    assert h_res % ws == 0 and w_res % ws == 0
    n = ws * ws
    n_win = (h_res // ws) * (w_res // ws)
    scale = (c // num_heads) ** -0.5

    shortcut = x
    # LN1 is fused inside the attention kernel (LN commutes with roll/partition,
    # which are pure token permutations).
    xi = x.reshape(b, h_res, w_res, c)
    if ss > 0:
        xi = jnp.roll(xi, shift=(-ss, -ss), axis=(1, 2))
    xw = window_partition(xi, ws).reshape(b, n_win, n, c)

    # relative position bias (nH, N, N) and shift mask (nW, N, N), kept separate
    # (no (nW,nH,N,N) broadcast materialization).
    rel_bias = params["rel_pos_bias_table"][
        _relative_position_index(ws).reshape(-1)]
    rel_bias = jnp.transpose(rel_bias.reshape(n, n, num_heads),
                             (2, 0, 1)).astype(jnp.float32)       # (nH, N, N)
    if ss > 0:
        mask = _shift_attn_mask(h_res, w_res, ws, ss)             # (nW, N, N)
    else:
        mask = jnp.zeros((1, n, n), dtype=jnp.float32)

    attn = window_attention_forward(
        xw, rel_bias, mask,
        params["norm1_g"], params["norm1_b"],
        params["wqkv"], params["bqkv"], params["wp"], params["bp"],
        num_heads=num_heads, scale=scale)

    attn = attn.reshape(b * n_win, ws, ws, c)
    xr = window_reverse(attn, ws, h_res, w_res)
    if ss > 0:
        xr = jnp.roll(xr, shift=(ss, ss), axis=(1, 2))
    x = shortcut + xr.reshape(b, l, c)

    # LN2 + MLP + residual, all in one kernel.
    x = mlp_ln_residual_forward(x, params["norm2_g"], params["norm2_b"],
                                params["w1"], params["b1"],
                                params["w2"], params["b2"])
    return x


# ----------------------------------------------------------------------------
# Parameters (PyTorch-Linear style init; weights stored as (fan_in, fan_out);
# qkv is a single fused Linear(dim, 3*dim) as in the PyTorch module)
# ----------------------------------------------------------------------------
def init_swin_block_params(key, dim, num_heads, window_size, mlp_ratio=4.0,
                           dtype=jnp.float32):
    hidden = int(dim * mlp_ratio)
    keys = jax.random.split(key, 9)

    def linear(kw, kb, fan_in, fan_out):
        bound = 1.0 / (fan_in ** 0.5)
        w = jax.random.uniform(kw, (fan_in, fan_out), minval=-bound,
                               maxval=bound, dtype=dtype)
        b = jax.random.uniform(kb, (fan_out,), minval=-bound, maxval=bound,
                               dtype=dtype)
        return w, b

    wqkv, bqkv = linear(keys[0], keys[1], dim, 3 * dim)
    wp, bp = linear(keys[2], keys[3], dim, dim)
    w1, b1 = linear(keys[4], keys[5], dim, hidden)
    w2, b2 = linear(keys[6], keys[7], hidden, dim)
    table = 0.02 * jax.random.normal(
        keys[8], ((2 * window_size - 1) ** 2, num_heads), dtype=dtype)
    return dict(
        norm1_g=jnp.ones((dim,), dtype), norm1_b=jnp.zeros((dim,), dtype),
        norm2_g=jnp.ones((dim,), dtype), norm2_b=jnp.zeros((dim,), dtype),
        wqkv=wqkv, bqkv=bqkv, wp=wp, bp=bp,
        w1=w1, b1=b1, w2=w2, b2=b2, rel_pos_bias_table=table)


# ----------------------------------------------------------------------------
# Pure-JAX reference (mirrors the PyTorch forward)
# ----------------------------------------------------------------------------
def swin_block_ref(x, p, *, input_resolution, num_heads, window_size,
                   shift_size):
    h_res, w_res = input_resolution
    b, l, c = x.shape
    if min(h_res, w_res) <= window_size:
        shift_size = 0
        window_size = min(h_res, w_res)
    ws, ss = window_size, shift_size
    n = ws * ws
    hd = c // num_heads
    scale = hd ** -0.5

    def ln(v, g, bb):
        mu = jnp.mean(v, axis=-1, keepdims=True)
        var = jnp.mean((v - mu) ** 2, axis=-1, keepdims=True)
        return (v - mu) * jax.lax.rsqrt(var + 1e-5) * g + bb

    shortcut = x
    xn = ln(x, p["norm1_g"], p["norm1_b"]).reshape(b, h_res, w_res, c)
    if ss > 0:
        xn = jnp.roll(xn, shift=(-ss, -ss), axis=(1, 2))
    xw = window_partition(xn, ws).reshape(-1, n, c)
    b_ = xw.shape[0]
    n_win = b_ // b

    qkv = xw @ p["wqkv"] + p["bqkv"]
    q, k, v = qkv[..., :c], qkv[..., c:2 * c], qkv[..., 2 * c:]

    def heads(t):
        return jnp.transpose(t.reshape(b_, n, num_heads, hd), (0, 2, 1, 3))

    q, k, v = heads(q) * scale, heads(k), heads(v)
    attn = jnp.einsum("bhqd,bhkd->bhqk", q, k)
    rel_bias = p["rel_pos_bias_table"][_relative_position_index(ws).reshape(-1)]
    rel_bias = jnp.transpose(rel_bias.reshape(n, n, num_heads), (2, 0, 1))
    attn = attn + rel_bias[None]
    if ss > 0:
        mask = _shift_attn_mask(h_res, w_res, ws, ss)
        attn = attn.reshape(b, n_win, num_heads, n, n) + mask[None, :, None]
        attn = attn.reshape(b_, num_heads, n, n)
    attn = jax.nn.softmax(attn, axis=-1)
    out = jnp.einsum("bhqk,bhkd->bhqd", attn, v)
    out = jnp.transpose(out, (0, 2, 1, 3)).reshape(b_, n, c)
    out = out @ p["wp"] + p["bp"]
    out = window_reverse(out.reshape(b_, ws, ws, c), ws, h_res, w_res)
    if ss > 0:
        out = jnp.roll(out, shift=(ss, ss), axis=(1, 2))
    x = shortcut + out.reshape(b, l, c)
    xn2 = ln(x, p["norm2_g"], p["norm2_b"])
    mlp = _gelu_exact(xn2 @ p["w1"] + p["b1"]) @ p["w2"] + p["b2"]
    return x + mlp


if __name__ == "__main__":
    # Small Swin block: C=32, 8x8 resolution, 2 heads, window 4, shift 2 (SW-MSA)
    batch = 2
    dim = 32
    input_resolution = (8, 8)
    num_heads = 2
    window_size = 4
    shift_size = 2
    mlp_ratio = 4.0
    seq_len = input_resolution[0] * input_resolution[1]

    key = jax.random.PRNGKey(0)
    kx, kp = jax.random.split(key)
    x = jax.random.normal(kx, (batch, seq_len, dim), dtype=jnp.float32)
    params = init_swin_block_params(kp, dim, num_heads, window_size, mlp_ratio)

    y = swin_block_forward(x, params, input_resolution=input_resolution,
                           num_heads=num_heads, window_size=window_size,
                           shift_size=shift_size)
    y = jax.block_until_ready(y)

    ref = swin_block_ref(x, params, input_resolution=input_resolution,
                         num_heads=num_heads, window_size=window_size,
                         shift_size=shift_size)

    assert y.shape == (batch, seq_len, dim)
    max_diff = float(jnp.max(jnp.abs(y - ref)))
    # Tolerance accounts for the EUP approximate-reciprocal softmax denominator.
    assert jnp.allclose(y, ref, atol=2e-3, rtol=2e-3), max_diff

    print("KERNEL_OK")
</pallas_src>

<mosaic_0001>
module attributes {stable_mosaic.version = 11 : i64} {
  func.func @kernel(%arg0: i32, %arg1: i32, %arg2: memref<1x4x16x32xf32, #tpu.memory_space<vmem>>, %arg3: memref<2x16x16xf32, #tpu.memory_space<vmem>>, %arg4: memref<4x16x16xf32, #tpu.memory_space<vmem>>, %arg5: memref<1x32xf32, #tpu.memory_space<vmem>>, %arg6: memref<1x32xf32, #tpu.memory_space<vmem>>, %arg7: memref<32x96xf32, #tpu.memory_space<vmem>>, %arg8: memref<1x96xf32, #tpu.memory_space<vmem>>, %arg9: memref<32x32xf32, #tpu.memory_space<vmem>>, %arg10: memref<1x32xf32, #tpu.memory_space<vmem>>, %arg11: memref<1x4x16x32xf32, #tpu.memory_space<vmem>>, %arg12: memref<64x32xf32, #tpu.memory_space<vmem>>) attributes {dimension_semantics = [#tpu.dimension_semantics<parallel>, #tpu.dimension_semantics<parallel>], iteration_bounds = array<i64: 2, 1>, scalar_prefetch = 0 : i64, scratch_operands = 1 : i64, tpu.core_type = #tpu.core_type<tc>, window_params = [{transform_indices = @transform_0, window_bounds = array<i64: 1, 4, 16, 32>}, {pipeline_mode = #tpu.pipeline_mode<synchronous>, transform_indices = @transform_1, window_bounds = array<i64: 2, 16, 16>}, {transform_indices = @transform_2, window_bounds = array<i64: 4, 16, 16>}, {pipeline_mode = #tpu.pipeline_mode<synchronous>, transform_indices = @transform_3, window_bounds = array<i64: 1, 32>}, {pipeline_mode = #tpu.pipeline_mode<synchronous>, transform_indices = @transform_4, window_bounds = array<i64: 1, 32>}, {pipeline_mode = #tpu.pipeline_mode<synchronous>, transform_indices = @transform_5, window_bounds = array<i64: 32, 96>}, {pipeline_mode = #tpu.pipeline_mode<synchronous>, transform_indices = @transform_6, window_bounds = array<i64: 1, 96>}, {pipeline_mode = #tpu.pipeline_mode<synchronous>, transform_indices = @transform_7, window_bounds = array<i64: 32, 32>}, {pipeline_mode = #tpu.pipeline_mode<synchronous>, transform_indices = @transform_8, window_bounds = array<i64: 1, 32>}, {transform_indices = @transform_9, window_bounds = array<i64: 1, 4, 16, 32>}]} {
    %c0 = arith.constant 0 : index
    %c0_0 = arith.constant 0 : index
    %c0_1 = arith.constant 0 : index
    %c0_2 = arith.constant 0 : index
    %0 = vector.load %arg2[%c0, %c0_0, %c0_1, %c0_2] : memref<1x4x16x32xf32, #tpu.memory_space<vmem>>, vector<1x4x16x32xf32>
    %1 = vector.shape_cast %0 : vector<1x4x16x32xf32> to vector<4x16x32xf32>
    %2 = vector.shape_cast %1 : vector<4x16x32xf32> to vector<64x32xf32>
    %cst = arith.constant dense<0.000000e+00> : vector<64xf32>
    %3 = vector.multi_reduction <add>, %2, %cst [1] : vector<64x32xf32> to vector<64xf32>
    %4 = vector.shape_cast %3 : vector<64xf32> to vector<64x1xf32>
    %cst_3 = arith.constant 3.200000e+01 : f32
    %5 = vector.broadcast %cst_3 : f32 to vector<64x1xf32>
    %6 = arith.divf %4, %5 : vector<64x1xf32>
    %7 = vector.broadcast %6 : vector<64x1xf32> to vector<64x32xf32>
    %8 = arith.subf %2, %7 : vector<64x32xf32>
    %9 = arith.mulf %8, %8 : vector<64x32xf32>
    %cst_4 = arith.constant dense<0.000000e+00> : vector<64xf32>
    %10 = vector.multi_reduction <add>, %9, %cst_4 [1] : vector<64x32xf32> to vector<64xf32>
    %11 = vector.shape_cast %10 : vector<64xf32> to vector<64x1xf32>
    %cst_5 = arith.constant 3.200000e+01 : f32
    %12 = vector.broadcast %cst_5 : f32 to vector<64x1xf32>
    %13 = arith.divf %11, %12 : vector<64x1xf32>
    %cst_6 = arith.constant 9.99999974E-6 : f32
    %14 = vector.broadcast %cst_6 : f32 to vector<64x1xf32>
    %15 = arith.addf %13, %14 : vector<64x1xf32>
    %16 = math.rsqrt %15 : vector<64x1xf32>
    %17 = vector.broadcast %16 : vector<64x1xf32> to vector<64x32xf32>
    %18 = arith.mulf %8, %17 : vector<64x32xf32>
    %c0_7 = arith.constant 0 : index
    %c0_8 = arith.constant 0 : index
    %19 = vector.load %arg5[%c0_7, %c0_8] : memref<1x32xf32, #tpu.memory_space<vmem>>, vector<1x32xf32>
    %20 = vector.broadcast %19 : vector<1x32xf32> to vector<64x32xf32>
    %21 = arith.mulf %18, %20 : vector<64x32xf32>
    %c0_9 = arith.constant 0 : index
    %c0_10 = arith.constant 0 : index
    %22 = vector.load %arg6[%c0_9, %c0_10] : memref<1x32xf32, #tpu.memory_space<vmem>>, vector<1x32xf32>
    %23 = vector.broadcast %22 : vector<1x32xf32> to vector<64x32xf32>
    %24 = arith.addf %21, %23 : vector<64x32xf32>
    %c0_11 = arith.constant 0 : index
    %c0_12 = arith.constant 0 : index
    %25 = vector.load %arg7[%c0_11, %c0_12] : memref<32x96xf32, #tpu.memory_space<vmem>>, vector<32x96xf32>
    %cst_13 = arith.constant dense<0.000000e+00> : vector<64x96xf32>
    %26 = tpu.matmul %24, %25, %cst_13 {dimension_numbers = #tpu.dot_dimension_numbers<[1], [0], [0], [1], [0, 0, 1, 1], [], []>} : vector<64x32xf32>, vector<32x96xf32>, vector<64x96xf32> -> vector<64x96xf32>
    %c0_14 = arith.constant 0 : index
    %c0_15 = arith.constant 0 : index
    %27 = vector.load %arg8[%c0_14, %c0_15] : memref<1x96xf32, #tpu.memory_space<vmem>>, vector<1x96xf32>
    %28 = vector.broadcast %27 : vector<1x96xf32> to vector<64x96xf32>
    %29 = arith.addf %26, %28 : vector<64x96xf32>
    %30 = vector.extract_strided_slice %29 {offsets = [0, 0], sizes = [64, 32], strides = [1, 1]} : vector<64x96xf32> to vector<64x32xf32>
    %cst_16 = arith.constant 2.500000e-01 : f32
    %31 = vector.broadcast %cst_16 : f32 to vector<64x32xf32>
    %32 = arith.mulf %30, %31 : vector<64x32xf32>
    %33 = vector.shape_cast %32 : vector<64x32xf32> to vector<4x16x32xf32>
    %34 = vector.extract_strided_slice %29 {offsets = [0, 32], sizes = [64, 32], strides = [1, 1]} : vector<64x96xf32> to vector<64x32xf32>
    %35 = vector.shape_cast %34 : vector<64x32xf32> to vector<4x16x32xf32>
    %36 = vector.extract_strided_slice %29 {offsets = [0, 64], sizes = [64, 32], strides = [1, 1]} : vector<64x96xf32> to vector<64x32xf32>
    %37 = vector.shape_cast %36 : vector<64x32xf32> to vector<4x16x32xf32>
    %c0_17 = arith.constant 0 : index
    %c0_18 = arith.constant 0 : index
    %c0_19 = arith.constant 0 : index
    %38 = vector.load %arg4[%c0_17, %c0_18, %c0_19] : memref<4x16x16xf32, #tpu.memory_space<vmem>>, vector<4x16x16xf32>
    %39 = vector.extract_strided_slice %33 {offsets = [0, 0, 0], sizes = [4, 16, 16], strides = [1, 1, 1]} : vector<4x16x32xf32> to vector<4x16x16xf32>
    %40 = vector.extract_strided_slice %35 {offsets = [0, 0, 0], sizes = [4, 16, 16], strides = [1, 1, 1]} : vector<4x16x32xf32> to vector<4x16x16xf32>
    "tpu.trace_start"() <{level = 10 : i32, message = "wqd,wkd->wqk"}> : () -> ()
    %cst_20 = arith.constant dense<0.000000e+00> : vector<4x16x16xf32>
    %41 = tpu.matmul %39, %40, %cst_20 {dimension_numbers = #tpu.dot_dimension_numbers<[2], [2], [1], [1], [0, 0, 0, 1, 1, 1], [0], [0]>} : vector<4x16x16xf32>, vector<4x16x16xf32>, vector<4x16x16xf32> -> vector<4x16x16xf32>
    "tpu.trace_stop"() : () -> ()
    %c0_21 = arith.constant 0 : index
    %c0_22 = arith.constant 0 : index
    %c0_23 = arith.constant 0 : index
    %42 = vector.load %arg3[%c0_21, %c0_22, %c0_23] : memref<2x16x16xf32, #tpu.memory_space<vmem>>, vector<1x16x16xf32>
    %43 = vector.shape_cast %42 : vector<1x16x16xf32> to vector<16x16xf32>
    %44 = vector.shape_cast %43 : vector<16x16xf32> to vector<1x16x16xf32>
    %45 = vector.broadcast %44 : vector<1x16x16xf32> to vector<4x16x16xf32>
    %46 = arith.addf %41, %45 : vector<4x16x16xf32>
    %47 = arith.addf %46, %38 : vector<4x16x16xf32>
    %cst_24 = arith.constant dense<0xFF800000> : vector<4x16xf32>
    %48 = vector.multi_reduction <maximumf>, %47, %cst_24 [2] : vector<4x16x16xf32> to vector<4x16xf32>
    %49 = vector.shape_cast %48 : vector<4x16xf32> to vector<4x16x1xf32>
    %50 = vector.broadcast %49 : vector<4x16x1xf32> to vector<4x16x16xf32>
    %51 = arith.subf %47, %50 : vector<4x16x16xf32>
    %52 = math.exp %51 : vector<4x16x16xf32>
    %cst_25 = arith.constant dense<0.000000e+00> : vector<4x16xf32>
    %53 = vector.multi_reduction <add>, %52, %cst_25 [2] : vector<4x16x16xf32> to vector<4x16xf32>
    %54 = vector.shape_cast %53 : vector<4x16xf32> to vector<4x16x1xf32>
    %55 = tpu.reciprocal %54 {approx = true} : vector<4x16x1xf32> -> vector<4x16x1xf32>
    %56 = vector.broadcast %55 : vector<4x16x1xf32> to vector<4x16x16xf32>
    %57 = arith.mulf %52, %56 : vector<4x16x16xf32>
    %58 = vector.extract_strided_slice %37 {offsets = [0, 0, 0], sizes = [4, 16, 16], strides = [1, 1, 1]} : vector<4x16x32xf32> to vector<4x16x16xf32>
    "tpu.trace_start"() <{level = 10 : i32, message = "wqk,wkd->wqd"}> : () -> ()
    %cst_26 = arith.constant dense<0.000000e+00> : vector<4x16x16xf32>
    %59 = tpu.matmul %57, %58, %cst_26 {dimension_numbers = #tpu.dot_dimension_numbers<[2], [1], [1], [2], [0, 0, 0, 1, 1, 2], [0], [0]>} : vector<4x16x16xf32>, vector<4x16x16xf32>, vector<4x16x16xf32> -> vector<4x16x16xf32>
    "tpu.trace_stop"() : () -> ()
    %60 = vector.shape_cast %59 : vector<4x16x16xf32> to vector<64x16xf32>
    %c0_27 = arith.constant 0 : index
    %c0_28 = arith.constant 0 : index
    %61 = vector.load %arg12[%c0_27, %c0_28] : memref<64x32xf32, #tpu.memory_space<vmem>>, vector<64x16xf32>
    tpu.vector_store %arg12[%c0_27, %c0_28], %60 {strides = array<i32>} : memref<64x32xf32, #tpu.memory_space<vmem>>, vector<64x16xf32>,
    %62 = vector.extract_strided_slice %33 {offsets = [0, 0, 16], sizes = [4, 16, 16], strides = [1, 1, 1]} : vector<4x16x32xf32> to vector<4x16x16xf32>
    %63 = vector.extract_strided_slice %35 {offsets = [0, 0, 16], sizes = [4, 16, 16], strides = [1, 1, 1]} : vector<4x16x32xf32> to vector<4x16x16xf32>
    "tpu.trace_start"() <{level = 10 : i32, message = "wqd,wkd->wqk"}> : () -> ()
    %cst_29 = arith.constant dense<0.000000e+00> : vector<4x16x16xf32>
    %64 = tpu.matmul %62, %63, %cst_29 {dimension_numbers = #tpu.dot_dimension_numbers<[2], [2], [1], [1], [0, 0, 0, 1, 1, 1], [0], [0]>} : vector<4x16x16xf32>, vector<4x16x16xf32>, vector<4x16x16xf32> -> vector<4x16x16xf32>
    "tpu.trace_stop"() : () -> ()
    %c1 = arith.constant 1 : index
    %c0_30 = arith.constant 0 : index
    %c0_31 = arith.constant 0 : index
    %65 = vector.load %arg3[%c1, %c0_30, %c0_31] : memref<2x16x16xf32, #tpu.memory_space<vmem>>, vector<1x16x16xf32>
    %66 = vector.shape_cast %65 : vector<1x16x16xf32> to vector<16x16xf32>
    %67 = vector.shape_cast %66 : vector<16x16xf32> to vector<1x16x16xf32>
    %68 = vector.broadcast %67 : vector<1x16x16xf32> to vector<4x16x16xf32>
    %69 = arith.addf %64, %68 : vector<4x16x16xf32>
    %70 = arith.addf %69, %38 : vector<4x16x16xf32>
    %cst_32 = arith.constant dense<0xFF800000> : vector<4x16xf32>
    %71 = vector.multi_reduction <maximumf>, %70, %cst_32 [2] : vector<4x16x16xf32> to vector<4x16xf32>
    %72 = vector.shape_cast %71 : vector<4x16xf32> to vector<4x16x1xf32>
    %73 = vector.broadcast %72 : vector<4x16x1xf32> to vector<4x16x16xf32>
    %74 = arith.subf %70, %73 : vector<4x16x16xf32>
    %75 = math.exp %74 : vector<4x16x16xf32>
    %cst_33 = arith.constant dense<0.000000e+00> : vector<4x16xf32>
    %76 = vector.multi_reduction <add>, %75, %cst_33 [2] : vector<4x16x16xf32> to vector<4x16xf32>
    %77 = vector.shape_cast %76 : vector<4x16xf32> to vector<4x16x1xf32>
    %78 = tpu.reciprocal %77 {approx = true} : vector<4x16x1xf32> -> vector<4x16x1xf32>
    %79 = vector.broadcast %78 : vector<4x16x1xf32> to vector<4x16x16xf32>
    %80 = arith.mulf %75, %79 : vector<4x16x16xf32>
    %81 = vector.extract_strided_slice %37 {offsets = [0, 0, 16], sizes = [4, 16, 16], strides = [1, 1, 1]} : vector<4x16x32xf32> to vector<4x16x16xf32>
    "tpu.trace_start"() <{level = 10 : i32, message = "wqk,wkd->wqd"}> : () -> ()
    %cst_34 = arith.constant dense<0.000000e+00> : vector<4x16x16xf32>
    %82 = tpu.matmul %80, %81, %cst_34 {dimension_numbers = #tpu.dot_dimension_numbers<[2], [1], [1], [2], [0, 0, 0, 1, 1, 2], [0], [0]>} : vector<4x16x16xf32>, vector<4x16x16xf32>, vector<4x16x16xf32> -> vector<4x16x16xf32>
    "tpu.trace_stop"() : () -> ()
    %83 = vector.shape_cast %82 : vector<4x16x16xf32> to vector<64x16xf32>
    %c0_35 = arith.constant 0 : index
    %c16 = arith.constant 16 : index
    %84 = vector.load %arg12[%c0_35, %c16] : memref<64x32xf32, #tpu.memory_space<vmem>>, vector<64x16xf32>
    tpu.vector_store %arg12[%c0_35, %c16], %83 {strides = array<i32>} : memref<64x32xf32, #tpu.memory_space<vmem>>, vector<64x16xf32>,
    %c0_36 = arith.constant 0 : index
    %c0_37 = arith.constant 0 : index
    %85 = vector.load %arg12[%c0_36, %c0_37] : memref<64x32xf32, #tpu.memory_space<vmem>>, vector<64x32xf32>
    %c0_38 = arith.constant 0 : index
    %c0_39 = arith.constant 0 : index
    %86 = vector.load %arg9[%c0_38, %c0_39] : memref<32x32xf32, #tpu.memory_space<vmem>>, vector<32x32xf32>
    %cst_40 = arith.constant dense<0.000000e+00> : vector<64x32xf32>
    %87 = tpu.matmul %85, %86, %cst_40 {dimension_numbers = #tpu.dot_dimension_numbers<[1], [0], [0], [1], [0, 0, 1, 1], [], []>} : vector<64x32xf32>, vector<32x32xf32>, vector<64x32xf32> -> vector<64x32xf32>
    %c0_41 = arith.constant 0 : index
    %c0_42 = arith.constant 0 : index
    %88 = vector.load %arg10[%c0_41, %c0_42] : memref<1x32xf32, #tpu.memory_space<vmem>>, vector<1x32xf32>
    %89 = vector.broadcast %88 : vector<1x32xf32> to vector<64x32xf32>
    %90 = arith.addf %87, %89 : vector<64x32xf32>
    %91 = vector.shape_cast %90 : vector<64x32xf32> to vector<4x16x32xf32>
    %c0_43 = arith.constant 0 : index
    %c0_44 = arith.constant 0 : index
    %c0_45 = arith.constant 0 : index
    %c0_46 = arith.constant 0 : index
    %92 = vector.load %arg11[%c0_43, %c0_44, %c0_45, %c0_46] : memref<1x4x16x32xf32, #tpu.memory_space<vmem>>, vector<1x4x16x32xf32>
    %93 = vector.shape_cast %92 : vector<1x4x16x32xf32> to vector<4x16x32xf32>
    %94 = vector.shape_cast %91 : vector<4x16x32xf32> to vector<1x4x16x32xf32>
    tpu.vector_store %arg11[%c0_43, %c0_44, %c0_45, %c0_46], %94 {strides = array<i32>} : memref<1x4x16x32xf32, #tpu.memory_space<vmem>>, vector<1x4x16x32xf32>,
    return
  }
  func.func @transform_0(%arg0: i32, %arg1: i32) -> (i32, i32, i32, i32) {
    %c0_i32 = arith.constant 0 : i32
    %c0_i32_0 = arith.constant 0 : i32
    %c0_i32_1 = arith.constant 0 : i32
    return %arg0, %arg1, %c0_i32, %c0_i32_0 : i32, i32, i32, i32
  }
  func.func @transform_1(%arg0: i32, %arg1: i32) -> (i32, i32, i32) {
    %c0_i32 = arith.constant 0 : i32
    %c0_i32_0 = arith.constant 0 : i32
    %c0_i32_1 = arith.constant 0 : i32
    %c0_i32_2 = arith.constant 0 : i32
    return %c0_i32, %c0_i32_0, %c0_i32_1 : i32, i32, i32
  }
  func.func @transform_2(%arg0: i32, %arg1: i32) -> (i32, i32, i32) {
    %c0_i32 = arith.constant 0 : i32
    %c0_i32_0 = arith.constant 0 : i32
    %c0_i32_1 = arith.constant 0 : i32
    return %arg1, %c0_i32, %c0_i32_0 : i32, i32, i32
  }
  func.func @transform_3(%arg0: i32, %arg1: i32) -> (i32, i32) {
    %c0_i32 = arith.constant 0 : i32
    %c0_i32_0 = arith.constant 0 : i32
    %c0_i32_1 = arith.constant 0 : i32
    return %c0_i32, %c0_i32_0 : i32, i32
  }
  func.func @transform_4(%arg0: i32, %arg1: i32) -> (i32, i32) {
    %c0_i32 = arith.constant 0 : i32
    %c0_i32_0 = arith.constant 0 : i32
    %c0_i32_1 = arith.constant 0 : i32
    return %c0_i32, %c0_i32_0 : i32, i32
  }
  func.func @transform_5(%arg0: i32, %arg1: i32) -> (i32, i32) {
    %c0_i32 = arith.constant 0 : i32
    %c0_i32_0 = arith.constant 0 : i32
    %c0_i32_1 = arith.constant 0 : i32
    return %c0_i32, %c0_i32_0 : i32, i32
  }
  func.func @transform_6(%arg0: i32, %arg1: i32) -> (i32, i32) {
    %c0_i32 = arith.constant 0 : i32
    %c0_i32_0 = arith.constant 0 : i32
    %c0_i32_1 = arith.constant 0 : i32
    return %c0_i32, %c0_i32_0 : i32, i32
  }
  func.func @transform_7(%arg0: i32, %arg1: i32) -> (i32, i32) {
    %c0_i32 = arith.constant 0 : i32
    %c0_i32_0 = arith.constant 0 : i32
    %c0_i32_1 = arith.constant 0 : i32
    return %c0_i32, %c0_i32_0 : i32, i32
  }
  func.func @transform_8(%arg0: i32, %arg1: i32) -> (i32, i32) {
    %c0_i32 = arith.constant 0 : i32
    %c0_i32_0 = arith.constant 0 : i32
    %c0_i32_1 = arith.constant 0 : i32
    return %c0_i32, %c0_i32_0 : i32, i32
  }
  func.func @transform_9(%arg0: i32, %arg1: i32) -> (i32, i32, i32, i32) {
    %c0_i32 = arith.constant 0 : i32
    %c0_i32_0 = arith.constant 0 : i32
    %c0_i32_1 = arith.constant 0 : i32
    return %arg0, %arg1, %c0_i32, %c0_i32_0 : i32, i32, i32, i32
  }
}

</mosaic_0001>

<bundles_post_ra>
// kernel: tpu_custom_call.1
= control target key start
LH: loop header
LB: loop body
LE: loop exit
PB: predicated region body
PF: predicated region fallthrough
CT: control target
= control target key end

     0   :  { %s3133_s0 = inlined_call_operand.hbm [shape: f32[2,4,16,32], index: 0, kind: input, shape index: {}]   ;;  %s3134_s1 = inlined_call_operand.hbm [shape: f32[2,16,16], index: 1, kind: input, shape index: {}]   ;;  %s3135_s2 = inlined_call_operand.hbm [shape: f32[4,16,16], index: 2, kind: input, shape index: {}]   ;;  %s3136_s3 = inlined_call_operand.vmem [shape: f32[1,32], index: 3, kind: input, shape index: {}]   ;;  %s3137_s4 = inlined_call_operand.vmem [shape: f32[1,32], index: 4, kind: input, shape index: {}]   ;;  %s3138_s5 = inlined_call_operand.hbm [shape: f32[32,96], index: 5, kind: input, shape index: {}]   ;;  %s3139_s6 = inlined_call_operand.vmem [shape: f32[1,96], index: 6, kind: input, shape index: {}]   ;;  %s3140_s7 = inlined_call_operand.hbm [shape: f32[32,32], index: 7, kind: input, shape index: {}]   ;;  %s3141_s8 = inlined_call_operand.vmem [shape: f32[1,32], index: 8, kind: input, shape index: {}]   ;;  %s3142_s9 = inlined_call_operand.hbm [shape: f32[2,4,16,32], index: 9, kind: output, shape index: {}]  }
   0x1   :  { %3148 = sst [smem:[#allocation19_spill]] %s3134_s1 }
   0x2   :  { %3149 = sst [smem:[#allocation20_spill]] %s3135_s2 }
   0x3   :  { %3150 = sst [smem:[#allocation21_spill]] %s3138_s5 }
   0x4   :  { %3151 = sst [smem:[#allocation22_spill]] %s3140_s7 }
   0x5   :  { %14 = vsyncpa [#allocation4], 0 }
   0x6   :  { %16 = vsyncpa [#allocation4 + $0x1], 0 }
   0x7   :  { %17 = vsyncpa [#allocation7], 0 }
   0x8   :  { %18 = vsyncpa [#allocation10], 0 }
   0x9   :  { %19 = vsyncpa [#allocation5], 0 }
   0xa   :  { %21 = vsyncpa [#allocation5 + $0x1], 0  ;;  %s2477_s30 = smov 0   ;;  %s2479_s10 = smov 0  }
   0xb   :  { %s2481_s11 = smov 0   ;;  %s2483_s12 = smov 0  }
   0xc   :  { %s2485_s13 = smov 0   ;;  %s2487_s14 = smov 0  }
   0xd LB: > { %s3143_s15 = sadd.s32 4294967295, %s2410_s14   ;;  %s1830_s16 = sadd.s32 4294967294, %s2410_s14   ;;  %s2410_s14 = sphi %s2487_s14, %s27_s14   ;;  %s2406_s13 = sphi %s2485_s13, %s3179_s13   ;;  %s2402_s12 = sphi %s2483_s12, %s3178_s12   ;;  %s2398_s11 = sphi %s2481_s11, %s3177_s11   ;;  %s2394_s10 = sphi %s2479_s10, %s3176_s10   ;;  %s2390_s30 = sphi %s2477_s30, %s3175_s30  }
   0xe   : > { %p61_p0 = scmp.ne.s32.totalorder %s2394_s10, %s2390_s30  ;;  %p2513_p1 = scmp.eq.s32.totalorder %s3143_s15, 0 }
   0xf   : > { %p266_p2 = scmp.eq.s32.totalorder %s1830_s16, 1  ;;  %p1831_p4 = scmp.ge.s32.totalorder %s2410_s14, 1 }
  0x10   : > { %p2519_p3 = por %p2513_p1, %p61_p0  ;;  %p273_p6 = scmp.lt.s32.totalorder %s2410_s14, 3 }
  0x11   : > { %p2524_p5 = por %p266_p2, %p61_p0  ;;  %s3156_s1 = sld [smem:[#allocation19_spill]] }
  0x12   : > { %p2532_p7 = pnand %p1831_p4, %p273_p6  ;;  %s2412_s24 = smov [#allocation6]  }
  0x13   : > { %s3154_s19 = scalar_select %p2524_p5, 1, 0 }
  0x14   : > { %p1950_p8 = pneg %p2532_p7  ;;  %s286_s25 = sshll.u32 %s2412_s24, 4  ;;  %s287_s25 = int_to_ptr.vmem [resolvable:$true] %s286_s25 }
  0x15   : > { %3155 = sst [smem:[#allocation17_spill]] %s3154_s19  ;;  %p1836_p10 = scmp.ge.s32.totalorder %s2410_s14, 2 }
  0x16   : > { %p2540_p9 = pnand %p1950_p8, %p2513_p1  ;;  %s3159_s5 = sld [smem:[#allocation21_spill]] }
  0x17   : > { %s284_s22 = sshll.u32 %s3156_s1, 4  ;;  %s3145_s16 = smov 128   ;;  %s285_s22 = int_to_ptr.hbm [resolvable:$true] %s284_s22 }
  0x18   : > { %s3146_s20 = smov 8   ;;  %s2415_s21 = smov [#allocation9]  }
  0x19   : > { %1953 = dma.hbm_to_vmem [thread:$0]  (!%p2540_p9), %s285_s22, 512, %s287_s25, [#allocation7], %s3145_s16, %s3145_s16, %s3146_s20  }
  0x1a   : > { %s324_s24 = sshll.u32 %s2415_s21, 4  ;;  %s3160_s2 = sld [smem:[#allocation20_spill]]  ;;  %s325_s24 = int_to_ptr.vmem [resolvable:$true] %s324_s24 }
  0x1b   : > { %s3161_s7 = sld [smem:[#allocation22_spill]]  ;;  %s2416_s28 = smov [#allocation8]  }
  0x1c   : > { %s322_s29 = sshll.u32 %s3159_s5, 4  ;;  %s304_s21 = sshll.u32 %s2416_s28, 4  ;;  %s323_s29 = int_to_ptr.hbm [resolvable:$true] %s322_s29  ;;  %s305_s21 = int_to_ptr.vmem [resolvable:$true] %s304_s21 }
  0x1d   : > { %1959 = dma.hbm_to_vmem [thread:$0]  (!%p2540_p9), %s323_s29, 512, %s325_s24, [#allocation10], %s3145_s16, %s3145_s16, %s3146_s20  }
  0x1e   : > { %s2417_s1 = smov [#allocation11]   ;;  %s3162_s29 = sadd.s32 4294967295, %s2410_s14  }
  0x1f   : > { %s341_s15 = sshll.u32 %s2417_s1, 4  ;;  %p260_p11 = scmp.eq.s32.totalorder %s3162_s29, 1  ;;  %s342_s15 = int_to_ptr.vmem [resolvable:$true] %s341_s15 }
  0x20   : > { %s302_s19 = sshll.u32 %s3160_s2, 4  ;;  %s39_s24 = sadd.s32 1, %s2406_s13  ;;  %s303_s19 = int_to_ptr.hbm [resolvable:$true] %s302_s19 }
  0x21   : > { %s339_s27 = sshll.u32 %s3161_s7, 4  ;;  %p41_p12 = scmp.ge.s32.totalorder %s39_s24, 2  ;;  %s340_s27 = int_to_ptr.hbm [resolvable:$true] %s339_s27 }
  0x22   : > { %1956 = dma.hbm_to_vmem [thread:$0]  (!%p2540_p9), %s303_s19, 1024, %s305_s21, [#allocation7], %s3145_s16, %s3145_s16, %s3146_s20  }
  0x23   : > { %1962 = dma.hbm_to_vmem [thread:$0]  (!%p2540_p9), %s340_s27, 512, %s342_s15, [#allocation10], %s3145_s16, %s3145_s16, %s3146_s20  }
  0x24   : > { %s48_s22 = sadd.s32 1, %s2398_s11  ;;  %p55_p13 = scmp.ne.s32.totalorder %s2398_s11, %s2394_s10 }
  0x25   : > { %p56_p0 = scmp.eq.s32.totalorder %s2410_s14, 0  ;;  %s3181_s24 = smov (%p41_p12, %s39_s24), 0 }
  0x26   : > { %3163 = sst [smem:[#allocation18_spill]] %s3181_s24  ;;  %p2583_p2 = por %p260_p11, %p55_p13 }
  0x27   : > { %p1975_p4 = scmp.lt.s32.totalorder %s2410_s14, 2  ;;  %s43_s26 = ssub.s32 %s2406_s13, %s3181_s24 }
  0x28   : > { %s358_s25 = sand.u32 1, %s2398_s11   ;;  %p46_p6 = scmp.eq.s32.totalorder %s43_s26, 0 }
  0x29   : > { %p57_p8 = por %p56_p0, %p55_p13  ;;  %s1837_s27 = sshll.u32 %s358_s25, 6 }
  0x2a   : > { %s1916_s28 = sshll.u32 %s2406_s13, 6  ;;  %s362_s20 = scalar_lea.vmem [#allocation3], %s1837_s27 }
  0x2b   : > { %s2593_s21 = scalar_select %p46_p6, %s2398_s11, %s48_s22  }
  0x2c   : > { %s370_s29 = scalar_lea.hbm %s3133_s0, %s1916_s28  ;;  %s373_s2 = sshll.u32 %s362_s20, 4  ;;  %s374_s2 = int_to_ptr.vmem [resolvable:$true] %s373_s2 }
  0x2d   : > { %s371_s16 = sshll.u32 %s370_s29, 4  ;;  %p1964_p9 = pnand %p1975_p4, %p57_p8  ;;  %s372_s16 = int_to_ptr.hbm [resolvable:$true] %s371_s16 }
  0x2e   : > { %s359_s5 = scalar_lea.sflag [#allocation4], %s358_s25  ;;  %s3165_s7 = smov 8  }
  0x2f   : > { %s3166_s24 = smov 128   ;;  %385 = sbr.rel (%p2532_p7) target bundleno = 1894 (0x766), region = 56 }
  0x30   : > { %1966 = dma.hbm_to_vmem [thread:$0]  (!%p1964_p9), %s372_s16, 1024, %s374_s2, %s359_s5, %s3166_s24, %s3166_s24, %s3165_s7  }
  0x31   : > { %s2606_s22 = sand.u32 (!%p2532_p7), 1, %s2394_s10  }
  0x32   : > { %s1841_s20 = sshll.u32 (!%p2532_p7), %s2606_s22, 6  ;;  %s388_s26 = scalar_lea.sflag (!%p2532_p7), [#allocation4], %s2606_s22 }
  0x33   : > { %s391_s27 = scalar_lea.vmem (!%p2532_p7), [#allocation3], %s1841_s20 }
  0x34   : > { %2373 = dma.done.wait (%p2519_p3), %s388_s26, 1024  }
  0x35   : > { %2375 = vsyncadd (%p2519_p3), %s388_s26, 4294966272 }
  0x36   : > { %2377 = dma.done.wait (%p2513_p1), [#allocation7], 1536  }
  0x37   : > { %2379 = vsyncadd (%p2513_p1), [#allocation7], 4294965760 }
  0x38   : > { %2381 = dma.done.wait (%p2513_p1), [#allocation10], 1024  }
  0x39   : > { %2383 = vsyncadd (%p2513_p1), [#allocation10], 4294966272  ;;  %vm458_vm0 = vcmask 261120   ;;  %v452_v0 = vld [vmem:[%s391_s27 + $0x10] sm:$0xff]  ;;  %v451_v1 = vld [vmem:[%s391_s27 + $0x8] sm:$0xff]  ;;  %v2418_v16 = vmov 32.0  }
  0x3a   : > { %v450_v2 = vld [vmem:[%s391_s27] sm:$0xff]  ;;  %v465_v3 = vsel %vm458_vm0, %v452_v0, 0.0  ;;  %v462_v4 = vsel %vm458_vm0, %v451_v1, 0.0  ;;  %v453_v6 = vld [vmem:[%s391_s27 + $0x18] sm:$0xff]  ;;  %v455_v7 = vld [vmem:[%s391_s27 + $0x28] sm:$0xff]  ;;  %2088 = vrcp.f32 %v2418_v16  ;;  %s2419_s16 = smov 96  }
  0x3b   : > { %v459_v5 = vsel %vm458_vm0, %v450_v2, 0.0  ;;  %466 = vadd.xlane.f32.xlu0 %v465_v3  ;;  %463 = vadd.xlane.f32.xlu2 %v462_v4  ;;  %v454_v8 = vld [vmem:[%s391_s27 + $0x20] sm:$0xff]  ;;  %v468_v9 = vsel %vm458_vm0, %v453_v6, 0.0  ;;  %v474_v10 = vsel %vm458_vm0, %v455_v7, 0.0  ;;  %v456_v12 = vld [vmem:[%s391_s27 + $0x30] sm:$0xff]  ;;  %v457_v13 = vld [vmem:[%s391_s27 + $0x38] sm:$0xff] }
  0x3c   : > { %460 = vadd.xlane.f32.xlu1 %v459_v5  ;;  %v471_v11 = vsel %vm458_vm0, %v454_v8, 0.0  ;;  %v477_v14 = vsel %vm458_vm0, %v456_v12, 0.0  ;;  %v480_v15 = vsel %vm458_vm0, %v457_v13, 0.0  ;;  %v669_v63 = vld [vmem:[#allocation9 + $0x18] sm:$0xff]  ;;  %s2420_s24 = smov 64   ;;  %s2421_s25 = smov 80  }
  0x3d   : > { %710 = vmatpush.msra.mxu0 %v669_v63  ;;  %1918 = vmatpush.msra.mxu1 %v669_v63  ;;  %s2422_s28 = smov 112   ;;  %s2423_s1 = smov 48  }
  0x3e   : > { %1919 = vmatpush.msra.mxu2 %v669_v63  ;;  %1920 = vmatpush.msra.mxu3 %v669_v63  ;;  %v2730_v63 = vld [vmem:[%s3137_s4] ss:$0 sm:$0xff]  ;;  %s2424_s15 = smov 16   ;;  %s446_s27 = scalar_lea.vmem [#allocation12], %s1841_s20 }
  0x3f   : > { %s1917_s20 = sshll.u32 %s2402_s12, 6  ;;  %s1699_s17 = sshll.u32 %s446_s27, 4  ;;  %s1700_s17 = int_to_ptr.vmem [resolvable:$true] %s1699_s17 }
  0x40   : > { %v2089_v17 = vpop.eup %2088  ;;  %s1698_s7 = scalar_lea.hbm %s3142_s9, %s1917_s20  ;;  %s1684_s23 = scalar_lea.sflag [#allocation5], %s2606_s22 }
  0x41   : > { %v484_v18 = vmul.f32 32.0, %v2089_v17  ;;  %vm488_vm1 = vweird.f32 %v2089_v17  ;;  %s1701_s18 = sshll.u32 %s1698_s7, 4  ;;  %s1702_s18 = int_to_ptr.hbm [resolvable:$true] %s1701_s18 }
  0x43   : > { %469 = vadd.xlane.f32.xlu0 %v468_v9  ;;  %475 = vadd.xlane.f32.xlu2 %v474_v10  ;;  %v485_v19 = vsub.f32 1.0, %v484_v18 }
  0x44   : > { %472 = vadd.xlane.f32.xlu1 %v471_v11 }
  0x45   : > { %v486_v20 = vmul.f32 %v2089_v17, %v485_v19 }
  0x47   : > { %v487_v21 = vadd.f32 %v2089_v17, %v486_v20 }
  0x49   : > { %v2632_v22 = vsel %vm488_vm1, %v2089_v17, %v487_v21 }
  0x4b   : > { %478 = vadd.xlane.f32.xlu0 %v477_v14 }
  0x4c   : > { %481 = vadd.xlane.f32.xlu1 %v480_v15 }
  0xae   : > { %v467_v23 = vpop.xlane.xlu0 %466  ;;  %v464_v24 = vpop.xlane.xlu2 %463 }
  0xaf   : > { %v492_v25 = vmul.f32 %v2632_v22, %v467_v23  ;;  %v461_v26 = vpop.xlane.xlu1 %460  ;;  %v491_v36 = vmul.f32 %v2632_v22, %v464_v24 }
  0xb0   : > { %v490_v27 = vmul.f32 %v2632_v22, %v461_v26 }
  0xb1   : > { %v2636_v28 = vsub.f32 %v452_v0, %v492_v25  ;;  %v2656_v44 = vsub.f32 %v451_v1, %v491_v36  ;;  %v668_v0 = vld [vmem:[#allocation9 + $0x10] sm:$0xff]  ;;  %v667_v1 = vld [vmem:[#allocation9 + $0x8] sm:$0xff] }
  0xb2   : > { %v2638_v29 = vsub.f32 %v450_v2, %v490_v27  ;;  %711 = vmatpush.msra.mxu0 %v668_v0  ;;  %1921 = vmatpush.msra.mxu1 %v668_v0  ;;  %v666_v2 = vld [vmem:[#allocation9] sm:$0xff] }
  0xb3   : > { %v508_v30 = vmul.f32 %v2636_v28, %v2636_v28  ;;  %v507_v53 = vmul.f32 %v2656_v44, %v2656_v44  ;;  %1922 = vmatpush.msra.mxu2 %v668_v0  ;;  %1923 = vmatpush.msra.mxu3 %v668_v0 }
  0xb4   : > { %v506_v31 = vmul.f32 %v2638_v29, %v2638_v29  ;;  %712 = vmatpush.msra.mxu0 %v667_v1  ;;  %1924 = vmatpush.msra.mxu1 %v667_v1 }
  0xb5   : > { %v520_v32 = vsel %vm458_vm0, %v508_v30, 0.0  ;;  %v517_v57 = vsel %vm458_vm0, %v507_v53, 0.0  ;;  %1925 = vmatpush.msra.mxu2 %v667_v1  ;;  %1926 = vmatpush.msra.mxu3 %v667_v1 }
  0xb6   : > { %v470_v33 = vpop.xlane.xlu0 %469  ;;  %521 = vadd.xlane.f32.xlu2 %v520_v32  ;;  %v476_v34 = vpop.xlane.xlu2 %475  ;;  %v514_v35 = vsel %vm458_vm0, %v506_v31, 0.0  ;;  %713 = vmatpush.msra.mxu0 %v666_v2 }
  0xb7   : > { %v493_v37 = vmul.f32 %v2632_v22, %v470_v33  ;;  %v495_v38 = vmul.f32 %v2632_v22, %v476_v34  ;;  %515 = vadd.xlane.f32.xlu1 %v514_v35  ;;  %v473_v39 = vpop.xlane.xlu1 %472  ;;  %1927 = vmatpush.msra.mxu1 %v666_v2 }
  0xb8   : > { %v494_v40 = vmul.f32 %v2632_v22, %v473_v39  ;;  %1928 = vmatpush.msra.mxu2 %v666_v2  ;;  %1929 = vmatpush.msra.mxu3 %v666_v2 }
  0xb9   : > { %v2650_v41 = vsub.f32 %v453_v6, %v493_v37  ;;  %v2652_v42 = vsub.f32 %v455_v7, %v495_v38 }
  0xba   : > { %v2654_v43 = vsub.f32 %v454_v8, %v494_v40 }
  0xbb   : > { %v509_v45 = vmul.f32 %v2650_v41, %v2650_v41  ;;  %v511_v46 = vmul.f32 %v2652_v42, %v2652_v42 }
  0xbc   : > { %v510_v47 = vmul.f32 %v2654_v43, %v2654_v43 }
  0xbd   : > { %v523_v48 = vsel %vm458_vm0, %v509_v45, 0.0  ;;  %v529_v49 = vsel %vm458_vm0, %v511_v46, 0.0 }
  0xbe   : > { %524 = vadd.xlane.f32.xlu0 %v523_v48  ;;  %v479_v50 = vpop.xlane.xlu0 %478  ;;  %v526_v51 = vsel %vm458_vm0, %v510_v47, 0.0 }
  0xbf   : > { %v496_v52 = vmul.f32 %v2632_v22, %v479_v50  ;;  %530 = vadd.xlane.f32.xlu1 %v529_v49  ;;  %527 = vadd.xlane.f32.xlu2 %v526_v51  ;;  %v482_v54 = vpop.xlane.xlu1 %481 }
  0xc0   : > { %v497_v55 = vmul.f32 %v2632_v22, %v482_v54 }
  0xc1   : > { %v2671_v56 = vsub.f32 %v456_v12, %v496_v52  ;;  %v2718_v52 = vld [vmem:[%s3136_s3] ss:$0 sm:$0xff] }
  0xc2   : > { %v2676_v59 = vsub.f32 %v457_v13, %v497_v55 }
  0xc3   : > { %v512_v58 = vmul.f32 %v2671_v56, %v2671_v56 }
  0xc4   : > { %v513_v61 = vmul.f32 %v2676_v59, %v2676_v59 }
  0xc5   : > { %v532_v60 = vsel %vm458_vm0, %v512_v58, 0.0 }
  0xc6   : > { %518 = vadd.xlane.f32.xlu0 %v517_v57  ;;  %v535_v62 = vsel %vm458_vm0, %v513_v61, 0.0 }
  0xc7   : > { %533 = vadd.xlane.f32.xlu2 %v532_v60 }
  0xce   : > { %536 = vadd.xlane.f32.xlu0 %v535_v62 }
 0x129   : > { %v522_v3 = vpop.xlane.xlu2 %521 }
 0x12a   : > { %v540_v4 = vmul.f32 %v522_v3, %v2632_v22  ;;  %v516_v5 = vpop.xlane.xlu1 %515 }
 0x12b   : > { %v538_v6 = vmul.f32 %v516_v5, %v2632_v22 }
 0x12c   : > { %v548_v7 = vadd.f32 1e-05, %v540_v4 }
 0x12d   : > { %v546_v8 = vadd.f32 1e-05, %v538_v6 }
 0x12e   : > { %2090 = vrsqrt.f32 %v548_v7  ;;  %vm580_vm5 = vweird.f32 %v548_v7 }
 0x12f   : > { %2092 = vrsqrt.f32 %v546_v8  ;;  %vm560_vm3 = vweird.f32 %v546_v8 }
 0x131   : > { %v525_v9 = vpop.xlane.xlu0 %524 }
 0x132   : > { %v541_v10 = vmul.f32 %v525_v9, %v2632_v22  ;;  %v528_v11 = vpop.xlane.xlu2 %527  ;;  %v531_v12 = vpop.xlane.xlu1 %530 }
 0x133   : > { %v542_v13 = vmul.f32 %v528_v11, %v2632_v22  ;;  %v543_v14 = vmul.f32 %v531_v12, %v2632_v22 }
 0x134   : > { %v2091_v15 = vpop.eup %2090  ;;  %v2687_v16 = vadd.f32 1e-05, %v541_v10 }
 0x135   : > { %v2093_v17 = vpop.eup %2092  ;;  %v575_v18 = vmul.f32 %v2091_v15, %v548_v7  ;;  %v2689_v19 = vadd.f32 1e-05, %v542_v13  ;;  %v2691_v20 = vadd.f32 1e-05, %v543_v14  ;;  %vm581_vm2 = vweird.f32 %v2091_v15 }
 0x136   : > { %v555_v21 = vmul.f32 %v2093_v17, %v546_v8  ;;  %2094 = vrsqrt.f32 %v2687_v16  ;;  %vm561_vm4 = vweird.f32 %v2093_v17  ;;  %vm2705_vm6 = vmor %vm580_vm5, %vm581_vm2  ;;  %vm590_vm8 = vweird.f32 %v2687_v16 }
 0x137   : > { %v576_v23 = vmul.f32 %v2091_v15, %v575_v18  ;;  %2096 = vrsqrt.f32 %v2689_v19  ;;  %vm562_vm7 = vmor %vm560_vm3, %vm561_vm4  ;;  %vm600_vm9 = vweird.f32 %v2689_v19  ;;  %vm610_vm10 = vweird.f32 %v2691_v20 }
 0x138   : > { %v556_v24 = vmul.f32 %v2093_v17, %v555_v21  ;;  %2098 = vrsqrt.f32 %v2691_v20 }
 0x139   : > { %v577_v25 = vmul.f32 0.5, %v576_v23  ;;  %v519_v26 = vpop.xlane.xlu0 %518 }
 0x13a   : > { %v557_v27 = vmul.f32 0.5, %v556_v24  ;;  %v539_v30 = vmul.f32 %v519_v26, %v2632_v22  ;;  %v534_v31 = vpop.xlane.xlu2 %533 }
 0x13b   : > { %v578_v32 = vsub.f32 1.5, %v577_v25  ;;  %v544_v33 = vmul.f32 %v534_v31, %v2632_v22 }
 0x13c   : > { %v2095_v34 = vpop.eup %2094  ;;  %v558_v35 = vsub.f32 1.5, %v557_v27  ;;  %v2698_v36 = vadd.f32 1e-05, %v539_v30 }
 0x13d   : > { %v2097_v37 = vpop.eup %2096  ;;  %v579_v38 = vmul.f32 %v2091_v15, %v578_v32  ;;  %v585_v39 = vmul.f32 %v2095_v34, %v2687_v16  ;;  %v2701_v40 = vadd.f32 1e-05, %v544_v33  ;;  %vm591_vm11 = vweird.f32 %v2095_v34 }
 0x13e   : > { %v2703_v45 = vpop.eup %2098  ;;  %v559_v47 = vmul.f32 %v2093_v17, %v558_v35  ;;  %v595_v48 = vmul.f32 %v2097_v37, %v2689_v19  ;;  %2100 = vrsqrt.f32 %v2698_v36  ;;  %vm601_vm12 = vweird.f32 %v2097_v37  ;;  %vm592_vm14 = vmor %vm590_vm8, %vm591_vm11 }
 0x13f   : > { %v583_v49 = vsel %vm2705_vm6, %v2091_v15, %v579_v38  ;;  %v586_v50 = vmul.f32 %v2095_v34, %v585_v39  ;;  %v605_v51 = vmul.f32 %v2703_v45, %v2691_v20  ;;  %2102 = vrsqrt.f32 %v2701_v40  ;;  %vm602_vm15 = vmor %vm600_vm9, %vm601_vm12 }
 0x140   : > { %v563_v53 = vsel %vm562_vm7, %v2093_v17, %v559_v47  ;;  %v596_v54 = vmul.f32 %v2097_v37, %v595_v48  ;;  %v636_v0 = vmul.f32 %v583_v49, %v2636_v28  ;;  %vm611_vm13 = vweird.f32 %v2703_v45 }
 0x141   : > { %v587_v55 = vmul.f32 0.5, %v586_v50  ;;  %v606_v57 = vmul.f32 %v2703_v45, %v605_v51  ;;  %v537_v58 = vpop.xlane.xlu0 %536  ;;  %v634_v60 = vmul.f32 %v563_v53, %v2638_v29  ;;  %vm2746_vm1 = vmor %vm610_vm10, %vm611_vm13  ;;  %vm620_vm3 = vweird.f32 %v2701_v40 }
 0x142   : > { %v597_v61 = vmul.f32 0.5, %v596_v54  ;;  %v545_v62 = vmul.f32 %v537_v58, %v2632_v22  ;;  %v648_v6 = vmul.f32 %v2718_v52, %v636_v0  ;;  %vm570_vm5 = vweird.f32 %v2698_v36  ;;  %v2086_v58 = vld [vmem:[%s3139_s6] ss:$0 sm:$0xff] }
 0x143   : > { %v588_v1 = vsub.f32 1.5, %v587_v55  ;;  %v607_v2 = vmul.f32 0.5, %v606_v57  ;;  %v646_v3 = vmul.f32 %v2718_v52, %v634_v60  ;;  %vm763_vm11 = vcmask 130048  }
 0x144   : > { %v2101_v4 = vpop.eup %2100  ;;  %v598_v5 = vsub.f32 1.5, %v597_v61  ;;  %v553_v29 = vadd.f32 1e-05, %v545_v62  ;;  %v660_v16 = vadd.f32 %v2730_v63, %v648_v6  ;;  %vm1585_vm12 = vcmask 261248  }
 0x145   : > { %v589_v7 = vmul.f32 %v2095_v34, %v588_v1  ;;  %v608_v22 = vsub.f32 1.5, %v607_v2  ;;  %v565_v8 = vmul.f32 %v2101_v4, %v2698_v36  ;;  %v2103_v9 = vpop.eup %2102  ;;  %v658_v10 = vadd.f32 %v2730_v63, %v646_v3 }
 0x146   : > { %v599_v28 = vmul.f32 %v2097_v37, %v598_v5  ;;  %2104 = vrsqrt.f32 %v553_v29  ;;  %v615_v14 = vmul.f32 %v2103_v9, %v2701_v40  ;;  %vm571_vm2 = vweird.f32 %v2101_v4  ;;  %1849 = vmatmul.msk.f32.vlgmr.msra.gmra.mxu1 %vm458_vm0, %v660_v16 }
 0x147   : > { %v593_v11 = vsel %vm592_vm14, %v2095_v34, %v589_v7  ;;  %v609_v12 = vmul.f32 %v2703_v45, %v608_v22  ;;  %v566_v13 = vmul.f32 %v2101_v4, %v565_v8  ;;  %1847 = vmatmul.msk.f32.vlgmr.msra.gmra.mxu0 %vm458_vm0, %v658_v10  ;;  %vm621_vm4 = vweird.f32 %v2103_v9  ;;  %vm572_vm6 = vmor %vm570_vm5, %vm571_vm2 }
 0x148   : > { %v603_v15 = vsel %vm602_vm15, %v2097_v37, %v599_v28  ;;  %v637_v18 = vmul.f32 %v593_v11, %v2650_v41  ;;  %v616_v21 = vmul.f32 %v2103_v9, %v615_v14  ;;  %vm2762_vm7 = vmor %vm620_vm3, %vm621_vm4  ;;  %vm630_vm8 = vweird.f32 %v553_v29 }
 0x149   : > { %v567_v19 = vmul.f32 0.5, %v566_v13  ;;  %v638_v23 = vmul.f32 %v603_v15, %v2654_v43  ;;  %v613_v24 = vsel %vm2746_vm1, %v2703_v45, %v609_v12 }
 0x14a   : > { %v649_v20 = vmul.f32 %v2718_v52, %v637_v18  ;;  %v617_v26 = vmul.f32 0.5, %v616_v21  ;;  %v639_v35 = vmul.f32 %v613_v24, %v2652_v42 }
 0x14b   : > { %v568_v25 = vsub.f32 1.5, %v567_v19  ;;  %v650_v41 = vmul.f32 %v2718_v52, %v638_v23 }
 0x14c   : > { %v2105_v27 = vpop.eup %2104  ;;  %v618_v30 = vsub.f32 1.5, %v617_v26  ;;  %v661_v33 = vadd.f32 %v2730_v63, %v649_v20  ;;  %v651_v47 = vmul.f32 %v2718_v52, %v639_v35 }
 0x14d   : > { %v569_v43 = vmul.f32 %v2101_v4, %v568_v25  ;;  %v625_v31 = vmul.f32 %v2105_v27, %v553_v29  ;;  %v662_v34 = vadd.f32 %v2730_v63, %v650_v41  ;;  %vm631_vm9 = vweird.f32 %v2105_v27 }
 0x14e   : > { %v619_v38 = vmul.f32 %v2103_v9, %v618_v30  ;;  %1850 = vmatmul.msk.f32.gmra.mxu1 %vm458_vm0, %v661_v33  ;;  %vm632_vm10 = vmor %vm630_vm8, %vm631_vm9  ;;  %v663_v51 = vadd.f32 %v2730_v63, %v651_v47 }
 0x14f   : > { %v573_v37 = vsel %vm572_vm6, %v2101_v4, %v569_v43  ;;  %v626_v39 = vmul.f32 %v2105_v27, %v625_v31  ;;  %1851 = vmatmul.msk.f32.vlgmr.msra.gmra.mxu2 %vm458_vm0, %v662_v34  ;;  %v755_v34 = vld [vmem:[#allocation6] sm:$0xff] }
 0x150   : > { %v635_v36 = vmul.f32 %v573_v37, %v2656_v44  ;;  %v623_v40 = vsel %vm2762_vm7, %v2103_v9, %v619_v38  ;;  %v2867_v37 = vld [vmem:[#allocation8] sm:$0xff] }
 0x151   : > { %v627_v45 = vmul.f32 0.5, %v626_v39  ;;  %v640_v42 = vmul.f32 %v623_v40, %v2671_v56 }
 0x152   : > { %v647_v46 = vmul.f32 %v2718_v52, %v635_v36  ;;  %v2869_v36 = vld [vmem:[#allocation8 + $0x10] sm:$0xff] }
 0x153   : > { %v628_v48 = vsub.f32 1.5, %v627_v45  ;;  %v652_v44 = vmul.f32 %v2718_v52, %v640_v42 }
 0x154   : > { %v659_v49 = vadd.f32 %v2730_v63, %v647_v46 }
 0x155   : > { %v629_v50 = vmul.f32 %v2105_v27, %v628_v48  ;;  %v664_v53 = vadd.f32 %v2730_v63, %v652_v44  ;;  %v756_v48 = vld [vmem:[#allocation6 + $0x8] sm:$0xff] }
 0x156   : > { %1848 = vmatmul.msk.f32.gmra.mxu0 %vm458_vm0, %v659_v49  ;;  %v2875_v44 = vld [vmem:[#allocation8 + $0x8] sm:$0xff] }
 0x157   : > { %v633_v54 = vsel %vm632_vm10, %v2105_v27, %v629_v50  ;;  %1852 = vmatmul.msk.f32.gmra.mxu2 %vm458_vm0, %v663_v51  ;;  %1853 = vmatmul.msk.f32.vlgmr.msra.gmra.mxu3 %vm458_vm0, %v664_v53 }
 0x158   : > { %v641_v56 = vmul.f32 %v633_v54, %v2676_v59 }
 0x15a   : > { %v653_v55 = vmul.f32 %v2718_v52, %v641_v56  ;;  %v2879_v56 = vld [vmem:[#allocation8 + $0x20] sm:$0xff] }
 0x15c   : > { %v665_v57 = vadd.f32 %v2730_v63, %v653_v55 }
 0x15f   : > { %1854 = vmatmul.msk.f32.gmra.mxu3 %vm458_vm0, %v665_v57 }
 0x1c3   : > { %v721_v60 = vpop.f32.mrf.mxu1 }
 0x1c4   : > { %v2791_v61 = vadd.f32 %v2086_v58, %v721_v60  ;;  %v715_v62 = vpop.f32.mrf.mxu0  ;;  %v2881_v60 = vld [vmem:[#allocation8 + $0x30] sm:$0xff] }
 0x1c5   : > { %v716_v1 = vadd.f32 %v2086_v58, %v715_v62 }
 0x1c6   : > { %799 = vrot.lane.b32.xlu2 %v2791_v61, %s2419_s16  ;;  %v2826_v16 = vmul.f32 0.25, %v2791_v61 }
 0x1c7   : > { %v739_v28 = vmul.f32 0.25, %v716_v1 }
 0x1cb   : > { %v724_v0 = vpop.f32.mrf.mxu1 }
 0x1cc   : > { %v2794_v59 = vadd.f32 %v2086_v58, %v724_v0 }
 0x1ce   : > { %801 = vrot.lane.b32.xlu1 %v2794_v59, %s2419_s16  ;;  %759 = vrot.lane.b32.xlu2 %v716_v1, %s2419_s16  ;;  %v2811_v9 = vpack.i.bf16 %v2791_v61, %v2794_v59  ;;  %v2835_v23 = vmul.f32 0.25, %v2794_v59 }
 0x1d2   : > { %v727_v52 = vpop.f32.mrf.mxu2 }
 0x1d3   : > { %v718_v63 = vpop.f32.mrf.mxu0  ;;  %v2799_v29 = vadd.f32 %v2086_v58, %v727_v52 }
 0x1d4   : > { %v719_v2 = vadd.f32 %v2086_v58, %v718_v63 }
 0x1d5   : > { %v2841_v20 = vmul.f32 0.25, %v2799_v29 }
 0x1d6   : > { %761 = vrot.lane.b32.xlu0 %v719_v2, %s2419_s16  ;;  %v2797_v3 = vpack.i.bf16 %v716_v1, %v719_v2  ;;  %v2843_v24 = vmul.f32 0.25, %v719_v2 }
 0x1da   : > { %v730_v4 = vpop.f32.mrf.mxu2  ;;  %v733_v5 = vpop.f32.mrf.mxu3 }
 0x1db   : > { %v2801_v6 = vadd.f32 %v2086_v58, %v730_v4  ;;  %v2805_v22 = vadd.f32 %v2086_v58, %v733_v5 }
 0x1dd   : > { %840 = vrot.lane.b32.xlu1 %v2801_v6, %s2419_s16  ;;  %v2851_v43 = vmul.f32 0.25, %v2801_v6  ;;  %v2854_v30 = vmul.f32 0.25, %v2805_v22 }
 0x1de   : > { %838 = vrot.lane.b32.xlu0 %v2799_v29, %s2419_s16 }
 0x1e2   : > { %v736_v7 = vpop.f32.mrf.mxu3 }
 0x1e3   : > { %v2807_v8 = vadd.f32 %v2086_v58, %v736_v7  ;;  %v2892_v7 = vld [vmem:[#allocation8 + $0x28] sm:$0xff] }
 0x1e5   : > { %879 = vrot.lane.b32.xlu2 %v2807_v8, %s2419_s16  ;;  %877 = vrot.lane.b32.xlu1 %v2805_v22, %s2419_s16  ;;  %v2862_v32 = vmul.f32 0.25, %v2807_v8  ;;  %s2334_s16 = sshra.s32 %s1702_s18, 4  ;;  %s2335_s16 = int_to_ptr.hbm [resolvable:$true] %s2334_s16 }
 0x1e6   : > { %2045 = vrot.lane.b32.xlu0 %v2811_v9, %s2420_s24  ;;  %s2336_s12 = scalar_lea.hbm %s2335_s16, 64  ;;  %p2341_p11 = scmp.lt.s32.totalorder %s2335_s16, %s3142_s9 }
 0x1e7   : > { %p2337_p1 = scmp.ne.s32.totalorder %s2335_s16, %s2336_s12 }
 0x1e9   : > { %p2338_p3 = pnand %p2337_p1, %p2583_p2 }
 0x1eb   : > { %p2339_p7 = pneg %p2338_p3 }
 0x1ed   : > { %2050 = vrot.lane.b32.xlu2 %v2797_v3, %s2420_s24 }
 0x1ee   : > { %1167 = vrot.lane.b32.xlu0 %v719_v2, %s2421_s25  ;;  %v2888_v2 = vld [vmem:[#allocation8 + $0x18] sm:$0xff] }
 0x1f5   : > { %1161 = vrot.lane.b32.xlu2 %v739_v28, %s2422_s28 }
 0x1f6   : > { %1165 = vrot.lane.b32.xlu0 %v716_v1, %s2421_s25 }
 0x220   : > { %v800_v10 = vpop.permute.xlu2 %799 }
 0x228   : > { %v760_v11 = vpop.permute.xlu2 %759 }
 0x23f   : > { %v880_v12 = vpop.permute.xlu2 %879 }
 0x240   : > { %v802_v13 = vpop.permute.xlu1 %801 }
 0x241   : > { %1859 = vmatpush.xpose.msk.msrb.mxu2 %vm763_vm11, %v802_v13 }
 0x245   : > { %1860 = vmatpush.xpose.msk.msrb.mxu2 %vm763_vm11, %v800_v10 }
 0x247   : > { %v2051_v14 = vpop.permute.xlu2 %2050 }
 0x248   : > { %v762_v15 = vpop.permute.xlu0 %761  ;;  %v2052_v17 = vunpack.i.l.bf16 %v2051_v14  ;;  %v2053_v18 = vunpack.i.h.bf16 %v2051_v14  ;;  %1861 = vmatmul.msk.f32.vlgmr.msrb.gmra.mxu2 %vm763_vm11, %v2826_v16  ;;  %v2903_v14 = vpack.i.bf16 %v2799_v29, %v2801_v6 }
 0x249   : > { %1855 = vmatpush.xpose.msk.msrb.mxu1 %vm763_vm11, %v762_v15  ;;  %v2911_v15 = vpack.i.bf16 %v2805_v22, %v2807_v8 }
 0x24a   : > { %1036 = vmatpush.msra.mxu2 %v2052_v17 }
 0x24c   : > { %1037 = vmatpush.msra.mxu2 %v2053_v18 }
 0x24d   : > { %1856 = vmatpush.xpose.msk.msrb.mxu1 %vm763_vm11, %v760_v11 }
 0x24f   : > { %v841_v19 = vpop.permute.xlu1 %840 }
 0x250   : > { %1857 = vmatmul.msk.f32.vlgmr.msrb.gmra.mxu1 %vm763_vm11, %v739_v28  ;;  %1863 = vmatpush.xpose.msk.msrb.mxu3 %vm763_vm11, %v841_v19  ;;  %v839_v21 = vpop.permute.xlu0 %838  ;;  %v2921_v19 = vld [vmem:[#allocation8 + $0x38] sm:$0xff] }
 0x251   : > { %1867 = vmatpush.xpose.msk.msra.mxu1 %vm763_vm11, %v880_v12  ;;  %1862 = vmatmul.msk.f32.gmra.mxu2 %vm763_vm11, %v2835_v23 }
 0x254   : > { %1864 = vmatpush.xpose.msk.msrb.mxu3 %vm763_vm11, %v839_v21 }
 0x257   : > { %1865 = vmatmul.msk.f32.vlgmr.msrb.gmra.mxu3 %vm763_vm11, %v2841_v20  ;;  %v878_v25 = vpop.permute.xlu1 %877 }
 0x258   : > { %1858 = vmatmul.msk.f32.gmra.mxu1 %vm763_vm11, %v2843_v24  ;;  %v2046_v26 = vpop.permute.xlu0 %2045 }
 0x259   : > { %1868 = vmatpush.xpose.msk.msra.mxu1 %vm763_vm11, %v878_v25  ;;  %v2047_v41 = vunpack.i.l.bf16 %v2046_v26  ;;  %v2048_v27 = vunpack.i.h.bf16 %v2046_v26 }
 0x25b   : > { %1071 = vmatpush.msra.mxu3 %v2047_v41 }
 0x25d   : > { %1072 = vmatpush.msra.mxu3 %v2048_v27 }
 0x25f   : > { %1866 = vmatmul.msk.f32.gmra.mxu3 %vm763_vm11, %v2851_v43 }
 0x260   : > { %1869 = vmatmul.msk.f32.vlgmr.msra.gmra.mxu1 %vm763_vm11, %v2854_v30  ;;  %v1168_v31 = vpop.permute.xlu0 %1167 }
 0x261   : > { %1879 = vmatpush.xpose.msk.msrb.mxu3 %vm763_vm11, %v1168_v31 }
 0x268   : > { %1870 = vmatmul.msk.f32.gmra.mxu1 %vm763_vm11, %v2862_v32  ;;  %v1166_v33 = vpop.permute.xlu0 %1165 }
 0x269   : > { %1880 = vmatpush.xpose.msk.msrb.mxu3 %vm763_vm11, %v1166_v33 }
 0x2cb   : > { %v830_v39 = vpop.f32.mrf.mxu2 }
 0x2cc   : > { %v831_v40 = vadd.f32 %v830_v39, %v755_v34 }
 0x2cd   : > { %v791_v35 = vpop.f32.mrf.mxu1 }
 0x2ce   : > { %v792_v38 = vadd.f32 %v791_v35, %v755_v34  ;;  %v916_v46 = vadd.f32 %v831_v40, %v2869_v36 }
 0x2d0   : > { %v914_v45 = vadd.f32 %v792_v38, %v2867_v37  ;;  %v928_v42 = vsel %vm763_vm11, %v916_v46, -inf }
 0x2d1   : > { %929 = vmax.xlane.f32.xlu0 %v928_v42 }
 0x2d2   : > { %v922_v47 = vsel %vm763_vm11, %v914_v45, -inf }
 0x2d3   : > { %923 = vmax.xlane.f32.xlu1 %v922_v47 }
 0x2d4   : > { %v833_v57 = vpop.f32.mrf.mxu2 }
 0x2d5   : > { %v794_v49 = vpop.f32.mrf.mxu1  ;;  %v834_v1 = vadd.f32 %v833_v57, %v756_v48 }
 0x2d6   : > { %v795_v50 = vadd.f32 %v794_v49, %v756_v48 }
 0x2d7   : > { %v917_v10 = vadd.f32 %v834_v1, %v2888_v2 }
 0x2d8   : > { %v915_v51 = vadd.f32 %v795_v50, %v2875_v44 }
 0x2d9   : > { %v931_v13 = vsel %vm763_vm11, %v917_v10, -inf }
 0x2da   : > { %v925_v53 = vsel %vm763_vm11, %v915_v51, -inf  ;;  %v869_v54 = vpop.f32.mrf.mxu3 }
 0x2db   : > { %v870_v55 = vadd.f32 %v869_v54, %v755_v34  ;;  %926 = vmax.xlane.f32.xlu0 %v925_v53 }
 0x2dd   : > { %v908_v58 = vpop.f32.mrf.mxu1  ;;  %v918_v0 = vadd.f32 %v870_v55, %v2879_v56 }
 0x2de   : > { %v909_v62 = vadd.f32 %v908_v58, %v755_v34 }
 0x2df   : > { %v934_v52 = vsel %vm763_vm11, %v918_v0, -inf }
 0x2e0   : > { %v2886_v63 = vadd.f32 %v909_v62, %v2881_v60  ;;  %935 = vmax.xlane.f32.xlu2 %v934_v52 }
 0x2e2   : > { %v940_v4 = vsel %vm763_vm11, %v2886_v63, -inf  ;;  %v872_v5 = vpop.f32.mrf.mxu3 }
 0x2e3   : > { %941 = vmax.xlane.f32.xlu1 %v940_v4  ;;  %v873_v28 = vadd.f32 %v872_v5, %v756_v48 }
 0x2e5   : > { %v2896_v11 = vadd.f32 %v873_v28, %v2892_v7  ;;  %v911_v17 = vpop.f32.mrf.mxu1 }
 0x2e6   : > { %v912_v18 = vadd.f32 %v911_v17, %v756_v48 }
 0x2e7   : > { %v937_v12 = vsel %vm763_vm11, %v2896_v11, -inf }
 0x2e8   : > { %938 = vmax.xlane.f32.xlu0 %v937_v12  ;;  %932 = vmax.xlane.f32.xlu2 %v931_v13  ;;  %v2924_v21 = vadd.f32 %v912_v18, %v2921_v19 }
 0x2fc   : > { %1163 = vrot.lane.b32.xlu1 %v2843_v24, %s2422_s28  ;;  %2055 = vrot.lane.b32.xlu0 %v2903_v14, %s2420_s24  ;;  %v943_v24 = vsel %vm763_vm11, %v2924_v21, -inf }
 0x300   : > { %2060 = vrot.lane.b32.xlu2 %v2911_v15, %s2420_s24 }
 0x304   : > { %1200 = vrot.lane.b32.xlu1 %v2826_v16, %s2422_s28 }
 0x308   : > { %1206 = vrot.lane.b32.xlu2 %v2794_v59, %s2421_s25  ;;  %v2928_v59 = vpop.permute.xlu2 %1161 }
 0x310   : > { %1204 = vrot.lane.b32.xlu2 %v2791_v61, %s2421_s25 }
 0x339   : > { %944 = vmax.xlane.f32.xlu2 %v943_v24 }
 0x344   : > { %v930_v16 = vpop.xlane.xlu0 %929 }
 0x345   : > { %v948_v41 = vsub.f32 %v916_v46, %v930_v16 }
 0x346   : > { %v924_v25 = vpop.xlane.xlu1 %923 }
 0x347   : > { %v946_v26 = vsub.f32 %v914_v45, %v924_v25  ;;  %v958_v61 = vmul.f32 1.442695, %v948_v41 }
 0x349   : > { %v954_v27 = vmul.f32 1.442695, %v946_v26 }
 0x34b   : > { %2106 = vpow2.f32 %v954_v27 }
 0x34c   : > { %2108 = vpow2.f32 %v958_v61 }
 0x34e   : > { %v927_v31 = vpop.xlane.xlu0 %926 }
 0x34f   : > { %v947_v34 = vsub.f32 %v915_v51, %v927_v31 }
 0x351   : > { %v2930_v33 = vpop.eup %2106  ;;  %1245 = vrot.lane.b32.xlu2 %v2801_v6, %s2421_s25  ;;  %v956_v39 = vmul.f32 1.442695, %v947_v34 }
 0x352   : > { %v970_v35 = vsel %vm763_vm11, %v2930_v33, 0.0  ;;  %v2936_v40 = vpop.eup %2108 }
 0x353   : > { %971 = vadd.xlane.f32.xlu1 %v970_v35  ;;  %v936_v38 = vpop.xlane.xlu2 %935  ;;  %2110 = vpow2.f32 %v956_v39  ;;  %v976_v46 = vsel %vm763_vm11, %v2936_v40, 0.0 }
 0x354   : > { %v950_v45 = vsub.f32 %v918_v0, %v936_v38 }
 0x356   : > { %v962_v42 = vmul.f32 1.442695, %v950_v45 }
 0x358   : > { %2112 = vpow2.f32 %v962_v42 }
 0x359   : > { %v2940_v48 = vpop.eup %2110 }
 0x35a   : > { %v973_v6 = vsel %vm763_vm11, %v2940_v48, 0.0 }
 0x35b   : > { %977 = vadd.xlane.f32.xlu1 %v976_v46  ;;  %v933_v47 = vpop.xlane.xlu2 %932  ;;  %v939_v53 = vpop.xlane.xlu0 %938 }
 0x35c   : > { %v949_v55 = vsub.f32 %v917_v10, %v933_v47  ;;  %v942_v10 = vpop.xlane.xlu1 %941  ;;  %v951_v17 = vsub.f32 %v2896_v11, %v939_v53 }
 0x35d   : > { %v952_v12 = vsub.f32 %v2886_v63, %v942_v10 }
 0x35e   : > { %v2944_v51 = vpop.eup %2112  ;;  %v960_v58 = vmul.f32 1.442695, %v949_v55  ;;  %v964_v18 = vmul.f32 1.442695, %v951_v17 }
 0x35f   : > { %v982_v57 = vsel %vm763_vm11, %v2944_v51, 0.0  ;;  %v966_v13 = vmul.f32 1.442695, %v952_v12 }
 0x360   : > { %2114 = vpow2.f32 %v960_v58 }
 0x361   : > { %2116 = vpow2.f32 %v966_v13  ;;  %v1159_v13 = vld [vmem:[#allocation6 + $0x10] sm:$0xff] }
 0x362   : > { %2118 = vpow2.f32 %v964_v18 }
 0x363   : > { %974 = vadd.xlane.f32.xlu1 %v973_v6  ;;  %v2061_v49 = vpop.permute.xlu2 %2060 }
 0x364   : > { %v2062_v50 = vunpack.i.l.bf16 %v2061_v49  ;;  %v2063_v54 = vunpack.i.h.bf16 %v2061_v49 }
 0x366   : > { %1141 = vmatpush.msrb.mxu2 %v2062_v50  ;;  %v2115_v4 = vpop.eup %2114 }
 0x367   : > { %v979_v28 = vsel %vm763_vm11, %v2115_v4, 0.0  ;;  %v2117_v24 = vpop.eup %2116 }
 0x368   : > { %1142 = vmatpush.msrb.mxu2 %v2063_v54  ;;  %v2119_v25 = vpop.eup %2118 }
 0x36b   : > { %983 = vadd.xlane.f32.xlu1 %v982_v57  ;;  %v1207_v62 = vpop.permute.xlu2 %1206 }
 0x36e   : > { %v2056_v0 = vpop.permute.xlu0 %2055  ;;  %v1164_v26 = vpop.permute.xlu1 %1163 }
 0x36f   : > { %v2057_v1 = vunpack.i.l.bf16 %v2056_v0  ;;  %v2058_v52 = vunpack.i.h.bf16 %v2056_v0 }
 0x371   : > { %1106 = vmatpush.msrb.mxu1 %v2057_v1 }
 0x373   : > { %1107 = vmatpush.msrb.mxu1 %v2058_v52  ;;  %v1205_v5 = vpop.permute.xlu2 %1204 }
 0x375   : > { %1883 = vmatpush.xpose.msk.msra.mxu1 %vm763_vm11, %v1207_v62 }
 0x376   : > { %v1201_v41 = vpop.permute.xlu1 %1200 }
 0x379   : > { %1884 = vmatpush.xpose.msk.msra.mxu1 %vm763_vm11, %v1205_v5 }
 0x37a   : > { %980 = vadd.xlane.f32.xlu2 %v979_v28 }
 0x384   : > { %1239 = vrot.lane.b32.xlu1 %v2841_v20, %s2422_s28  ;;  %v988_v20 = vsel %vm763_vm11, %v2117_v24, 0.0 }
 0x392   : > { %1243 = vrot.lane.b32.xlu2 %v2799_v29, %s2421_s25 }
 0x39a   : > { %1202 = vrot.lane.b32.xlu2 %v2835_v23, %s2422_s28 }
 0x3a2   : > { %1282 = vrot.lane.b32.xlu2 %v2805_v22, %s2421_s25  ;;  %v985_v22 = vsel %vm763_vm11, %v2119_v25, 0.0 }
 0x3aa   : > { %1280 = vrot.lane.b32.xlu2 %v2862_v32, %s2422_s28 }
 0x3ac   : > { %v945_v29 = vpop.xlane.xlu2 %944 }
 0x3ad   : > { %v953_v23 = vsub.f32 %v2924_v21, %v945_v29 }
 0x3ae   : > { %989 = vadd.xlane.f32.xlu1 %v988_v20  ;;  %v1160_v20 = vld [vmem:[#allocation6 + $0x18] sm:$0xff] }
 0x3af   : > { %v968_v63 = vmul.f32 1.442695, %v953_v23 }
 0x3b1   : > { %2120 = vpow2.f32 %v968_v63 }
 0x3b4   : > { %v1246_v31 = vpop.permute.xlu2 %1245 }
 0x3b6   : > { %986 = vadd.xlane.f32.xlu1 %v985_v22 }
 0x3b7   : > { %v2121_v11 = vpop.eup %2120 }
 0x3b8   : > { %v991_v16 = vsel %vm763_vm11, %v2121_v11, 0.0 }
 0x3b9   : > { %992 = vadd.xlane.f32.xlu0 %v991_v16 }
 0x3c6   : > { %v972_v32 = vpop.xlane.xlu1 %971 }
 0x3c7   : > { %2122 = vrcp.f32 %v972_v32 }
 0x3cd   : > { %v2123_v27 = vpop.eup %2122  ;;  %1241 = vrot.lane.b32.xlu0 %v2851_v43, %s2422_s28 }
 0x3ce   : > { %v1002_v61 = vmul.f32 %v2123_v27, %v2930_v33  ;;  %v978_v21 = vpop.xlane.xlu1 %977 }
 0x3cf   : > { %2124 = vrcp.f32 %v978_v21  ;;  %1284 = vrot.lane.b32.xlu1 %v2807_v8, %s2421_s25 }
 0x3d0   : > { %1871 = vmatmul.msk.f32.vlgmr.msra.gmra.mxu2 %vm763_vm11, %v1002_v61 }
 0x3d1   : > { %1887 = vmatpush.xpose.msk.msra.mxu2 %vm763_vm11, %v1246_v31 }
 0x3d5   : > { %v2125_v34 = vpop.eup %2124 }
 0x3d6   : > { %v1004_v35 = vmul.f32 %v2125_v34, %v2936_v40  ;;  %v975_v38 = vpop.xlane.xlu1 %974 }
 0x3d7   : > { %2126 = vrcp.f32 %v975_v38  ;;  %1278 = vrot.lane.b32.xlu1 %v2854_v30, %s2422_s28  ;;  %s2340_s28 = scalar_lea.hbm %s3142_s9, 128 }
 0x3d8   : > { %1873 = vmatmul.msk.f32.vlgmr.msra.gmra.mxu3 %vm763_vm11, %v1004_v35  ;;  %p2342_p12 = scmp.lt.s32.totalorder %s2340_s28, %s2336_s12 }
 0x3da   : > { %p2343_p13 = por %p2342_p12, %p2341_p11 }
 0x3dc   : > { %p2344_p0 = pnand %p2343_p13, %p2339_p7 }
 0x3dd   : > { %v2127_v43 = vpop.eup %2126 }
 0x3de   : > { %v984_v33 = vpop.xlane.xlu1 %983  ;;  %v1003_v39 = vmul.f32 %v2127_v43, %v2940_v48 }
 0x3df   : > { %2128 = vrcp.f32 %v984_v33 }
 0x3e0   : > { %1872 = vmatmul.msk.f32.gmra.mxu2 %vm763_vm11, %v1003_v39 }
 0x3e5   : > { %v2129_v8 = vpop.eup %2128 }
 0x3e6   : > { %v1006_v45 = vmul.f32 %v2129_v8, %v2944_v51 }
 0x3e8   : > { %1875 = vmatmul.msk.f32.vlgmr.msrb.gmra.mxu1 %vm763_vm11, %v1006_v45 }
 0x3ed   : > { %v981_v40 = vpop.xlane.xlu2 %980 }
 0x3ee   : > { %2130 = vrcp.f32 %v981_v40 }
 0x3f4   : > { %v2131_v46 = vpop.eup %2130 }
 0x3f5   : > { %v1244_v47 = vpop.permute.xlu2 %1243  ;;  %v1005_v42 = vmul.f32 %v2131_v46, %v2115_v4 }
 0x3f6   : > { %1888 = vmatpush.xpose.msk.msra.mxu2 %vm763_vm11, %v1244_v47  ;;  %v1240_v30 = vpop.permute.xlu1 %1239 }
 0x3f7   : > { %1874 = vmatmul.msk.f32.gmra.mxu3 %vm763_vm11, %v1005_v42 }
 0x3ff   : > { %1881 = vmatmul.msk.f32.vlgmr.msrb.gmra.mxu3 %vm763_vm11, %v2928_v59  ;;  %v1203_v59 = vpop.permute.xlu2 %1202 }
 0x407   : > { %1882 = vmatmul.msk.f32.gmra.mxu3 %vm763_vm11, %v1164_v26  ;;  %v1283_v62 = vpop.permute.xlu2 %1282 }
 0x40f   : > { %v1281_v52 = vpop.permute.xlu2 %1280 }
 0x421   : > { %v990_v48 = vpop.xlane.xlu1 %989 }
 0x422   : > { %2132 = vrcp.f32 %v990_v48 }
 0x428   : > { %v2133_v6 = vpop.eup %2132 }
 0x429   : > { %v1008_v49 = vmul.f32 %v2133_v6, %v2117_v24  ;;  %v987_v50 = vpop.xlane.xlu1 %986 }
 0x42a   : > { %2134 = vrcp.f32 %v987_v50 }
 0x42b   : > { %1877 = vmatmul.msk.f32.vlgmr.msrb.gmra.mxu2 %vm763_vm11, %v1008_v49 }
 0x42c   : > { %v993_v51 = vpop.xlane.xlu0 %992 }
 0x42d   : > { %2136 = vrcp.f32 %v993_v51 }
 0x430   : > { %v2135_v53 = vpop.eup %2134 }
 0x431   : > { %v1007_v54 = vmul.f32 %v2135_v53, %v2119_v25 }
 0x433   : > { %1876 = vmatmul.msk.f32.gmra.mxu1 %vm763_vm11, %v1007_v54  ;;  %v2137_v55 = vpop.eup %2136 }
 0x434   : > { %v1009_v57 = vmul.f32 %v2137_v55, %v2121_v11 }
 0x436   : > { %1878 = vmatmul.msk.f32.gmra.mxu2 %vm763_vm11, %v1009_v57 }
 0x43b   : > { %1885 = vmatmul.msk.f32.vlgmr.msra.gmra.mxu1 %vm763_vm11, %v1201_v41 }
 0x43e   : > { %1889 = vmatmul.msk.f32.vlgmr.msra.gmra.mxu2 %vm763_vm11, %v1240_v30 }
 0x43f   : > { %v1242_v0 = vpop.permute.xlu0 %1241 }
 0x441   : > { %v1285_v58 = vpop.permute.xlu1 %1284 }
 0x442   : > { %1891 = vmatpush.xpose.msk.msra.mxu3 %vm763_vm11, %v1285_v58 }
 0x443   : > { %1886 = vmatmul.msk.f32.gmra.mxu1 %vm763_vm11, %v1203_v59 }
 0x446   : > { %1892 = vmatpush.xpose.msk.msra.mxu3 %vm763_vm11, %v1283_v62  ;;  %1890 = vmatmul.msk.f32.gmra.mxu2 %vm763_vm11, %v1242_v0 }
 0x449   : > { %v1279_v1 = vpop.permute.xlu1 %1278 }
 0x44a   : > { %1893 = vmatmul.msk.f32.vlgmr.msra.gmra.mxu3 %vm763_vm11, %v1279_v1 }
 0x452   : > { %1894 = vmatmul.msk.f32.gmra.mxu3 %vm763_vm11, %v1281_v52 }
 0x453   : > { %v1039_v4 = vpop.f32.mrf.mxu2 }
 0x454   : > { %1150 = vst.msk [vmem:[#allocation2] sm:$0xff] %vm763_vm11, %v1039_v4 }
 0x45b   : > { %v1074_v5 = vpop.f32.mrf.mxu3 }
 0x45c   : > { %1152 = vst.msk [vmem:[#allocation2 + $0x10] sm:$0xff] %vm763_vm11, %v1074_v5 }
 0x463   : > { %v1042_v28 = vpop.f32.mrf.mxu2 }
 0x464   : > { %1151 = vst.msk [vmem:[#allocation2 + $0x8] sm:$0xff] %vm763_vm11, %v1042_v28 }
 0x465   : > { %v1109_v10 = vpop.f32.mrf.mxu1 }
 0x466   : > { %1154 = vst.msk [vmem:[#allocation2 + $0x20] sm:$0xff] %vm763_vm11, %v1109_v10 }
 0x47a   : > { %v1077_v12 = vpop.f32.mrf.mxu3 }
 0x47b   : > { %1153 = vst.msk [vmem:[#allocation2 + $0x18] sm:$0xff] %vm763_vm11, %v1077_v12 }
 0x482   : > { %v1194_v17 = vpop.f32.mrf.mxu3 }
 0x483   : > { %v1195_v18 = vadd.f32 %v1194_v17, %v1159_v13 }
 0x485   : > { %v1317_v24 = vadd.f32 %v1195_v18, %v2867_v37 }
 0x487   : > { %v1325_v29 = vsel %vm763_vm11, %v1317_v24, -inf }
 0x488   : > { %1326 = vmax.xlane.f32.xlu1 %v1325_v29 }
 0x48a   : > { %v1197_v23 = vpop.f32.mrf.mxu3 }
 0x48b   : > { %v1198_v63 = vadd.f32 %v1197_v23, %v1160_v20 }
 0x48d   : > { %v1318_v25 = vadd.f32 %v1198_v63, %v2875_v44 }
 0x48f   : > { %v1328_v26 = vsel %vm763_vm11, %v1318_v25, -inf }
 0x490   : > { %1329 = vmax.xlane.f32.xlu0 %v1328_v26 }
 0x4ae   : > { %v1144_v22 = vpop.f32.mrf.mxu2 }
 0x4af   : > { %1156 = vst.msk [vmem:[#allocation2 + $0x30] sm:$0xff] %vm763_vm11, %v1144_v22 }
 0x4b0   : > { %v1112_v11 = vpop.f32.mrf.mxu1 }
 0x4b1   : > { %1155 = vst.msk [vmem:[#allocation2 + $0x28] sm:$0xff] %vm763_vm11, %v1112_v11 }
 0x4b8   : > { %v1233_v16 = vpop.f32.mrf.mxu1 }
 0x4b9   : > { %v1234_v41 = vadd.f32 %v1233_v16, %v1159_v13  ;;  %v1147_v37 = vpop.f32.mrf.mxu2 }
 0x4ba   : > { %1157 = vst.msk [vmem:[#allocation2 + $0x38] sm:$0xff] %vm763_vm11, %v1147_v37 }
 0x4bb   : > { %v1319_v32 = vadd.f32 %v1234_v41, %v2869_v36 }
 0x4bd   : > { %v1331_v27 = vsel %vm763_vm11, %v1319_v32, -inf }
 0x4be   : > { %1332 = vmax.xlane.f32.xlu2 %v1331_v27 }
 0x4c0   : > { %v1236_v44 = vpop.f32.mrf.mxu1 }
 0x4c1   : > { %v1237_v61 = vadd.f32 %v1236_v44, %v1160_v20  ;;  %v1272_v21 = vpop.f32.mrf.mxu2 }
 0x4c2   : > { %v1273_v31 = vadd.f32 %v1272_v21, %v1159_v13 }
 0x4c3   : > { %v1320_v34 = vadd.f32 %v1237_v61, %v2888_v2 }
 0x4c4   : > { %v1321_v35 = vadd.f32 %v1273_v31, %v2879_v56 }
 0x4c5   : > { %v1334_v38 = vsel %vm763_vm11, %v1320_v34, -inf }
 0x4c6   : > { %1335 = vmax.xlane.f32.xlu1 %v1334_v38  ;;  %v1337_v43 = vsel %vm763_vm11, %v1321_v35, -inf }
 0x4c7   : > { %1338 = vmax.xlane.f32.xlu0 %v1337_v43 }
 0x4c9   : > { %v1275_v33 = vpop.f32.mrf.mxu2 }
 0x4ca   : > { %v1276_v39 = vadd.f32 %v1275_v33, %v1160_v20 }
 0x4cc   : > { %v1322_v8 = vadd.f32 %v1276_v39, %v2892_v7 }
 0x4cd   : > { %v1311_v36 = vpop.f32.mrf.mxu3 }
 0x4ce   : > { %v1312_v45 = vadd.f32 %v1311_v36, %v1159_v13  ;;  %v1340_v40 = vsel %vm763_vm11, %v1322_v8, -inf }
 0x4cf   : > { %1341 = vmax.xlane.f32.xlu2 %v1340_v40 }
 0x4d0   : > { %v1323_v46 = vadd.f32 %v1312_v45, %v2881_v60 }
 0x4d2   : > { %v1343_v2 = vsel %vm763_vm11, %v1323_v46, -inf }
 0x4d3   : > { %1344 = vmax.xlane.f32.xlu1 %v1343_v2 }
 0x4d5   : > { %v1314_v56 = vpop.f32.mrf.mxu3 }
 0x4d6   : > { %v1315_v47 = vadd.f32 %v1314_v56, %v1160_v20 }
 0x4d8   : > { %v1324_v42 = vadd.f32 %v1315_v47, %v2921_v19 }
 0x4da   : > { %v1346_v30 = vsel %vm763_vm11, %v1324_v42, -inf }
 0x4db   : > { %1347 = vmax.xlane.f32.xlu0 %v1346_v30 }
 0x4ec   : > { %2065 = vrot.lane.b32.xlu1 %v2797_v3, %s2423_s1 }
 0x4f4   : > { %2075 = vrot.lane.b32.xlu1 %v2903_v14, %s2423_s1 }
 0x4fb   : > { %v1327_v7 = vpop.xlane.xlu1 %1326 }
 0x4fc   : > { %2080 = vrot.lane.b32.xlu1 %v2911_v15, %s2423_s1  ;;  %v1349_v48 = vsub.f32 %v1317_v24, %v1327_v7 }
 0x4fe   : > { %v1357_v60 = vmul.f32 1.442695, %v1349_v48 }
 0x500   : > { %2138 = vpow2.f32 %v1357_v60 }
 0x503   : > { %v1330_v6 = vpop.xlane.xlu0 %1329 }
 0x504   : > { %v1350_v49 = vsub.f32 %v1318_v25, %v1330_v6 }
 0x506   : > { %v3025_v50 = vpop.eup %2138  ;;  %v1359_v51 = vmul.f32 1.442695, %v1350_v49 }
 0x507   : > { %v1373_v19 = vsel %vm763_vm11, %v3025_v50, 0.0 }
 0x508   : > { %2140 = vpow2.f32 %v1359_v51  ;;  %1374 = vadd.xlane.f32.xlu2 %v1373_v19 }
 0x50e   : > { %v3029_v53 = vpop.eup %2140 }
 0x50f   : > { %v1376_v3 = vsel %vm763_vm11, %v3029_v53, 0.0 }
 0x510   : > { %1377 = vadd.xlane.f32.xlu0 %v1376_v3 }
 0x524   : > { %2070 = vrot.lane.b32.xlu0 %v2811_v9, %s2423_s1 }
 0x531   : > { %v1333_v14 = vpop.xlane.xlu2 %1332 }
 0x532   : > { %v1351_v15 = vsub.f32 %v1319_v32, %v1333_v14 }
 0x534   : > { %v1361_v54 = vmul.f32 1.442695, %v1351_v15 }
 0x536   : > { %2142 = vpow2.f32 %v1361_v54 }
 0x539   : > { %v1336_v55 = vpop.xlane.xlu1 %1335 }
 0x53a   : > { %v1352_v57 = vsub.f32 %v1320_v34, %v1336_v55  ;;  %v1339_v59 = vpop.xlane.xlu0 %1338 }
 0x53b   : > { %v1353_v62 = vsub.f32 %v1321_v35, %v1339_v59 }
 0x53c   : > { %v3034_v58 = vpop.eup %2142  ;;  %v1363_v0 = vmul.f32 1.442695, %v1352_v57 }
 0x53d   : > { %v1379_v1 = vsel %vm763_vm11, %v3034_v58, 0.0  ;;  %v1365_v52 = vmul.f32 1.442695, %v1353_v62 }
 0x53e   : > { %2144 = vpow2.f32 %v1363_v0  ;;  %1380 = vadd.xlane.f32.xlu2 %v1379_v1  ;;  %v1605_v1 = vld [vmem:[#allocation11 + $0x18] sm:$0xff] }
 0x53f   : > { %2146 = vpow2.f32 %v1365_v52  ;;  %v1604_v52 = vld [vmem:[#allocation11 + $0x10] sm:$0xff] }
 0x542   : > { %v1342_v4 = vpop.xlane.xlu2 %1341 }
 0x543   : > { %v1354_v9 = vsub.f32 %v1322_v8, %v1342_v4  ;;  %v1603_v4 = vld [vmem:[#allocation11 + $0x8] sm:$0xff] }
 0x544   : > { %v3038_v5 = vpop.eup %2144 }
 0x545   : > { %v1382_v28 = vsel %vm763_vm11, %v3038_v5, 0.0  ;;  %v1367_v13 = vmul.f32 1.442695, %v1354_v9  ;;  %v3042_v18 = vpop.eup %2146 }
 0x546   : > { %1383 = vadd.xlane.f32.xlu2 %v1382_v28  ;;  %v1345_v10 = vpop.xlane.xlu1 %1344  ;;  %v1385_v24 = vsel %vm763_vm11, %v3042_v18, 0.0 }
 0x547   : > { %v1355_v12 = vsub.f32 %v1323_v46, %v1345_v10 }
 0x549   : > { %v1369_v17 = vmul.f32 1.442695, %v1355_v12 }
 0x54b   : > { %2148 = vpow2.f32 %v1369_v17 }
 0x54c   : > { %2150 = vpow2.f32 %v1367_v13 }
 0x54e   : > { %v1348_v29 = vpop.xlane.xlu0 %1347  ;;  %1386 = vadd.xlane.f32.xlu2 %v1385_v24 }
 0x54f   : > { %v1356_v20 = vsub.f32 %v1324_v42, %v1348_v29 }
 0x551   : > { %v2149_v23 = vpop.eup %2148  ;;  %v1371_v63 = vmul.f32 1.442695, %v1356_v20 }
 0x552   : > { %v3046_v25 = vpop.eup %2150  ;;  %v1391_v26 = vsel %vm763_vm11, %v2149_v23, 0.0 }
 0x553   : > { %1392 = vadd.xlane.f32.xlu0 %v1391_v26  ;;  %2152 = vpow2.f32 %v1371_v63  ;;  %v1388_v22 = vsel %vm763_vm11, %v3046_v25, 0.0 }
 0x556   : > { %1389 = vadd.xlane.f32.xlu2 %v1388_v22 }
 0x559   : > { %v2153_v11 = vpop.eup %2152 }
 0x55a   : > { %v1394_v16 = vsel %vm763_vm11, %v2153_v11, 0.0 }
 0x55e   : > { %1395 = vadd.xlane.f32.xlu2 %v1394_v16  ;;  %v2066_v41 = vpop.permute.xlu1 %2065 }
 0x55f   : > { %v2067_v37 = vunpack.i.l.bf16 %v2066_v41  ;;  %v2068_v32 = vunpack.i.h.bf16 %v2066_v41  ;;  %v2087_v41 = vld [vmem:[%s3141_s8] ss:$0 sm:$0xff] }
 0x561   : > { %1439 = vmatpush.msrb.mxu0 %v2067_v37 }
 0x563   : > { %1440 = vmatpush.msrb.mxu0 %v2068_v32 }
 0x565   : > { %1646 = vmatpush.msra.mxu0 %v1605_v1 }
 0x566   : > { %v2076_v27 = vpop.permute.xlu1 %2075 }
 0x567   : > { %v2077_v44 = vunpack.i.l.bf16 %v2076_v27  ;;  %v2078_v61 = vunpack.i.h.bf16 %v2076_v27  ;;  %1647 = vmatpush.msra.mxu0 %v1604_v52 }
 0x569   : > { %1509 = vmatpush.msrb.mxu2 %v2077_v44  ;;  %1648 = vmatpush.msra.mxu0 %v1603_v4 }
 0x56b   : > { %1510 = vmatpush.msrb.mxu2 %v2078_v61 }
 0x56e   : > { %v2081_v21 = vpop.permute.xlu1 %2080 }
 0x56f   : > { %v2082_v31 = vunpack.i.l.bf16 %v2081_v21  ;;  %v2083_v34 = vunpack.i.h.bf16 %v2081_v21 }
 0x571   : > { %1544 = vmatpush.msrb.mxu3 %v2082_v31 }
 0x573   : > { %1545 = vmatpush.msrb.mxu3 %v2083_v34 }
 0x57b   : > { %v1375_v35 = vpop.xlane.xlu2 %1374 }
 0x57c   : > { %2154 = vrcp.f32 %v1375_v35 }
 0x582   : > { %v2155_v38 = vpop.eup %2154 }
 0x583   : > { %v1378_v43 = vpop.xlane.xlu0 %1377  ;;  %v1405_v33 = vmul.f32 %v2155_v38, %v3025_v50 }
 0x584   : > { %2156 = vrcp.f32 %v1378_v43 }
 0x585   : > { %1895 = vmatmul.msk.f32.vlgmr.msrb.gmra.mxu0 %vm763_vm11, %v1405_v33 }
 0x58a   : > { %v2157_v39 = vpop.eup %2156 }
 0x58b   : > { %v1406_v36 = vmul.f32 %v2157_v39, %v3029_v53 }
 0x58d   : > { %1896 = vmatmul.msk.f32.gmra.mxu0 %vm763_vm11, %v1406_v36 }
 0x596   : > { %v2071_v8 = vpop.permute.xlu0 %2070 }
 0x597   : > { %v2072_v45 = vunpack.i.l.bf16 %v2071_v8  ;;  %v2073_v40 = vunpack.i.h.bf16 %v2071_v8 }
 0x599   : > { %1474 = vmatpush.msrb.mxu1 %v2072_v45 }
 0x59b   : > { %1475 = vmatpush.msrb.mxu1 %v2073_v40 }
 0x5b1   : > { %v1381_v46 = vpop.xlane.xlu2 %1380 }
 0x5b2   : > { %2158 = vrcp.f32 %v1381_v46 }
 0x5b8   : > { %v2159_v2 = vpop.eup %2158 }
 0x5b9   : > { %v1407_v56 = vmul.f32 %v2159_v2, %v3034_v58  ;;  %v1384_v47 = vpop.xlane.xlu2 %1383 }
 0x5ba   : > { %2160 = vrcp.f32 %v1384_v47 }
 0x5bb   : > { %1897 = vmatmul.msk.f32.vlgmr.msrb.gmra.mxu1 %vm763_vm11, %v1407_v56 }
 0x5c0   : > { %v2161_v42 = vpop.eup %2160 }
 0x5c1   : > { %v1387_v30 = vpop.xlane.xlu2 %1386  ;;  %v1408_v7 = vmul.f32 %v2161_v42, %v3038_v5  ;;  %v1602_v5 = vld [vmem:[#allocation11] sm:$0xff] }
 0x5c2   : > { %2162 = vrcp.f32 %v1387_v30  ;;  %1649 = vmatpush.msra.mxu0 %v1602_v5 }
 0x5c3   : > { %1898 = vmatmul.msk.f32.gmra.mxu1 %vm763_vm11, %v1408_v7 }
 0x5c6   : > { %v1393_v48 = vpop.xlane.xlu0 %1392 }
 0x5c7   : > { %2164 = vrcp.f32 %v1393_v48 }
 0x5c8   : > { %v2163_v60 = vpop.eup %2162 }
 0x5c9   : > { %v1409_v6 = vmul.f32 %v2163_v60, %v3042_v18  ;;  %v1390_v49 = vpop.xlane.xlu2 %1389 }
 0x5ca   : > { %2166 = vrcp.f32 %v1390_v49 }
 0x5cb   : > { %1899 = vmatmul.msk.f32.vlgmr.msrb.gmra.mxu2 %vm763_vm11, %v1409_v6 }
 0x5cd   : > { %v2165_v50 = vpop.eup %2164 }
 0x5ce   : > { %v1411_v51 = vmul.f32 %v2165_v50, %v2149_v23 }
 0x5d0   : > { %v2167_v19 = vpop.eup %2166  ;;  %1901 = vmatmul.msk.f32.vlgmr.msrb.gmra.mxu3 %vm763_vm11, %v1411_v51 }
 0x5d1   : > { %v1396_v53 = vpop.xlane.xlu2 %1395  ;;  %v1410_v3 = vmul.f32 %v2167_v19, %v3046_v25 }
 0x5d2   : > { %2168 = vrcp.f32 %v1396_v53 }
 0x5d3   : > { %1900 = vmatmul.msk.f32.gmra.mxu2 %vm763_vm11, %v1410_v3 }
 0x5d8   : > { %v2169_v14 = vpop.eup %2168 }
 0x5d9   : > { %v1412_v15 = vmul.f32 %v2169_v14, %v2153_v11 }
 0x5db   : > { %1902 = vmatmul.msk.f32.gmra.mxu3 %vm763_vm11, %v1412_v15 }
 0x602   : > { %v1442_v54 = vpop.f32.mrf.mxu0 }
 0x603   : > { %1561 = vrot.lane.b32.xlu1 %v1442_v54, %s2424_s15 }
 0x60a   : > { %v1445_v55 = vpop.f32.mrf.mxu0 }
 0x60b   : > { %1563 = vrot.lane.b32.xlu2 %v1445_v55, %s2424_s15 }
 0x638   : > { %v1477_v57 = vpop.f32.mrf.mxu1 }
 0x639   : > { %1565 = vrot.lane.b32.xlu1 %v1477_v57, %s2424_s15 }
 0x640   : > { %v1480_v59 = vpop.f32.mrf.mxu1 }
 0x641   : > { %1567 = vrot.lane.b32.xlu1 %v1480_v59, %s2424_s15 }
 0x64e   : > { %v1512_v58 = vpop.f32.mrf.mxu2 }
 0x64f   : > { %1569 = vrot.lane.b32.xlu1 %v1512_v58, %s2424_s15 }
 0x653   : > { %v1547_v62 = vpop.f32.mrf.mxu3 }
 0x656   : > { %v1515_v0 = vpop.f32.mrf.mxu2 }
 0x657   : > { %1573 = vrot.lane.b32.xlu1 %v1547_v62, %s2424_s15  ;;  %1571 = vrot.lane.b32.xlu2 %v1515_v0, %s2424_s15 }
 0x65e   : > { %v1550_v9 = vpop.f32.mrf.mxu3 }
 0x65f   : > { %1575 = vrot.lane.b32.xlu0 %v1550_v9, %s2424_s15 }
 0x665   : > { %v1564_v28 = vpop.permute.xlu2 %1563 }
 0x666   : > { %1587 = vst.msk [vmem:[#allocation2 + $0x8] sm:$0xff] %vm1585_vm12, %v1564_v28 }
 0x66d   : > { %v1595_v13 = vld [vmem:[#allocation2 + $0x8] sm:$0xff] }
 0x675   : > { %v1562_v10 = vpop.permute.xlu1 %1561 }
 0x676   : > { %1586 = vst.msk [vmem:[#allocation2] sm:$0xff] %vm1585_vm12, %v1562_v10 }
 0x67d   : > { %v1594_v12 = vld [vmem:[#allocation2] sm:$0xff] }
 0x67e   : > { %1903 = vmatmul.msk.f32.vlgmr.msra.gmra.mxu0 %vm458_vm0, %v1594_v12 }
 0x686   : > { %1904 = vmatmul.msk.f32.gmra.mxu0 %vm458_vm0, %v1595_v13 }
 0x6ab   : > { %v1566_v17 = vpop.permute.xlu1 %1565 }
 0x6ac   : > { %1588 = vst.msk [vmem:[#allocation2 + $0x10] sm:$0xff] %vm1585_vm12, %v1566_v17 }
 0x6b1   : > { %v1572_v18 = vpop.permute.xlu2 %1571 }
 0x6b2   : > { %1591 = vst.msk [vmem:[#allocation2 + $0x28] sm:$0xff] %vm1585_vm12, %v1572_v18 }
 0x6b3   : > { %v1568_v24 = vpop.permute.xlu1 %1567  ;;  %v1596_v29 = vld [vmem:[#allocation2 + $0x10] sm:$0xff] }
 0x6b4   : > { %1589 = vst.msk [vmem:[#allocation2 + $0x18] sm:$0xff] %vm1585_vm12, %v1568_v24  ;;  %1905 = vmatmul.msk.f32.gmra.mxu0 %vm458_vm0, %v1596_v29 }
 0x6b9   : > { %v1599_v22 = vld [vmem:[#allocation2 + $0x28] sm:$0xff] }
 0x6bb   : > { %v1597_v20 = vld [vmem:[#allocation2 + $0x18] sm:$0xff] }
 0x6bc   : > { %1906 = vmatmul.msk.f32.gmra.mxu0 %vm458_vm0, %v1597_v20 }
 0x6c1   : > { %v1570_v23 = vpop.permute.xlu1 %1569 }
 0x6c2   : > { %1590 = vst.msk [vmem:[#allocation2 + $0x20] sm:$0xff] %vm1585_vm12, %v1570_v23 }
 0x6c9   : > { %v1574_v63 = vpop.permute.xlu1 %1573  ;;  %v1598_v25 = vld [vmem:[#allocation2 + $0x20] sm:$0xff] }
 0x6ca   : > { %1592 = vst.msk [vmem:[#allocation2 + $0x30] sm:$0xff] %vm1585_vm12, %v1574_v63  ;;  %1907 = vmatmul.msk.f32.gmra.mxu0 %vm458_vm0, %v1598_v25 }
 0x6d1   : > { %v1576_v26 = vpop.permute.xlu0 %1575  ;;  %v1600_v11 = vld [vmem:[#allocation2 + $0x30] sm:$0xff] }
 0x6d2   : > { %1593 = vst.msk [vmem:[#allocation2 + $0x38] sm:$0xff] %vm1585_vm12, %v1576_v26  ;;  %1908 = vmatmul.msk.f32.gmra.mxu0 %vm458_vm0, %v1599_v22 }
 0x6d9   : > { %v1601_v16 = vld [vmem:[#allocation2 + $0x38] sm:$0xff] }
 0x6da   : > { %1909 = vmatmul.msk.f32.gmra.mxu0 %vm458_vm0, %v1600_v11 }
 0x6e2   : > { %1910 = vmatmul.msk.f32.gmra.mxu0 %vm458_vm0, %v1601_v16 }
 0x6fb   : > { %v1651_v37 = vpop.f32.mrf.mxu0 }
 0x6fc   : > { %v1652_v32 = vadd.f32 %v2087_v41, %v1651_v37 }
 0x6fe   : > { %1675 = vst.msk [vmem:[%s446_s27] sm:$0xff] %vm458_vm0, %v1652_v32 }
 0x703   : > { %v1654_v27 = vpop.f32.mrf.mxu0 }
 0x704   : > { %v1655_v44 = vadd.f32 %v2087_v41, %v1654_v27 }
 0x706   : > { %1676 = vst.msk [vmem:[%s446_s27 + $0x8] sm:$0xff] %vm458_vm0, %v1655_v44 }
 0x731   : > { %v1657_v61 = vpop.f32.mrf.mxu0 }
 0x732   : > { %v1658_v21 = vadd.f32 %v2087_v41, %v1657_v61 }
 0x734   : > { %1677 = vst.msk [vmem:[%s446_s27 + $0x10] sm:$0xff] %vm458_vm0, %v1658_v21 }
 0x739   : > { %v1660_v31 = vpop.f32.mrf.mxu0 }
 0x73a   : > { %v1661_v34 = vadd.f32 %v2087_v41, %v1660_v31 }
 0x73c   : > { %1678 = vst.msk [vmem:[%s446_s27 + $0x18] sm:$0xff] %vm458_vm0, %v1661_v34 }
 0x747   : > { %v1663_v35 = vpop.f32.mrf.mxu0 }
 0x748   : > { %v1664_v38 = vadd.f32 %v2087_v41, %v1663_v35 }
 0x74a   : > { %1679 = vst.msk [vmem:[%s446_s27 + $0x20] sm:$0xff] %vm458_vm0, %v1664_v38 }
 0x74f   : > { %v1666_v43 = vpop.f32.mrf.mxu0 }
 0x750   : > { %v1667_v33 = vadd.f32 %v2087_v41, %v1666_v43 }
 0x752   : > { %1680 = vst.msk [vmem:[%s446_s27 + $0x28] sm:$0xff] %vm458_vm0, %v1667_v33 }
 0x757   : > { %v1669_v39 = vpop.f32.mrf.mxu0 }
 0x758   : > { %v1670_v36 = vadd.f32 %v2087_v41, %v1669_v39 }
 0x75a   : > { %1681 = vst.msk [vmem:[%s446_s27 + $0x30] sm:$0xff] %vm458_vm0, %v1670_v36 }
 0x75f   : > { %v1672_v8 = vpop.f32.mrf.mxu0 }
 0x760   : > { %v1673_v45 = vadd.f32 %v2087_v41, %v1672_v8 }
 0x762   : > { %1682 = vst.msk [vmem:[%s446_s27 + $0x38] sm:$0xff] %vm458_vm0, %v1673_v45 }
 0x763   : > { %2347 = shalt.err (!%p2344_p0)
}
 0x764   : > { %s2425_s22 = smov 128   ;;  %s2426_s29 = smov 8  }
 0x765   : > { %1948 = dma.vmem_to_hbm [thread:$0]  (%p2583_p2), %s1700_s17, 1024, %s1702_s18, %s1684_s23, %s2425_s22, %s2425_s22, %s2426_s29  }
 0x766 PF: > { %s1716_s27 = sand.u32 1, %s2390_s30   ;;  %p1968_p4 = pnand %p1836_p10, %p2524_p5 }
 0x767   : > { %s1717_s20 = scalar_lea.sflag [#allocation5], %s1716_s27 }
 0x768   : > { %p1969_p6 = pneg %p1968_p4 }
 0x76a   : > { %2385 = dma.done.wait (%p1969_p6), %s1717_s20, 1024  }
 0x76b   : > { %2387 = vsyncadd (%p1969_p6), %s1717_s20, 4294966272  ;;  %s27_s14 = sadd.s32 1, %s2410_s14   ;;  %s3174_s19 = sld [smem:[#allocation18_spill]] }
 0x76c   : > { %p24_p8 = scmp.ge.s32.totalorder %s27_s14, 4   ;;  %s3175_s30 = smov %s2394_s10 }
 0x76d   : > { %s3176_s10 = smov %s2398_s11  ;;  %s3177_s11 = smov %s2593_s21 }
 0x76e   : > { %s3178_s12 = smov %s2406_s13  ;;  %26 = sbr.rel (!%p24_p8) target bundleno = 13 (0xd), region = 119 }
 0x771   : > { %s3179_s13 = smov %s3174_s19 }
 0x773   :  { %1723 = vsyncpa [#allocation4], 1 }
 0x774   :  { %1725 = vsyncpa [#allocation4 + $0x1], 1 }
 0x775   :  { %1726 = vsyncpa [#allocation7], 1 }
 0x776   :  { %1727 = vsyncpa [#allocation10], 1 }
 0x777   :  { %1728 = vsyncpa [#allocation5], 1 }
 0x778   :  { %1730 = vsyncpa [#allocation5 + $0x1], 1 }

</bundles_post_ra>
